<compile_context>
chip_gen: v7x
topology: tpu7x:2x2x1
jax: 0.10.0
libtpu: 0.0.40
codegen_flags: <defaults>
</compile_context>

<pallas_src>
import functools

import jax
import jax.numpy as jnp
from jax.experimental import pallas as pl
from jax.experimental.pallas import tpu as pltpu

LN_EPS = 1e-5  # PyTorch nn.LayerNorm default


def _layernorm(x, w, b):
    mu = jnp.mean(x, axis=-1, keepdims=True)
    xc = x - mu
    var = jnp.mean(xc * xc, axis=-1, keepdims=True)
    return xc * jax.lax.rsqrt(var + LN_EPS) * w + b


# --------------------------------------------------------------------------
# Fused Pallas kernel: embedding + all layers + heads, one batch tile/step.
# --------------------------------------------------------------------------
def _fused_forward_kernel(tok_ref, emb_ref, pos_ref,
                          ln1_w_ref, ln1_b_ref, in_w_ref, in_b_ref,
                          out_w_ref, out_b_ref, ln2_w_ref, ln2_b_ref,
                          ff1_w_ref, ff1_b_ref, ff2_w_ref, ff2_b_ref,
                          fn_w_ref, fn_b_ref, pol_w_ref, pol_b_ref,
                          val_w_ref, val_b_ref,
                          out_ref,
                          x_sc,
                          *, num_heads, bt, seq, out_pad):
    layer = pl.program_id(1)
    last = pl.num_programs(1) - 1

    E = x_sc.shape[-1]
    dh = E // num_heads
    scale = 1.0 / (float(dh) ** 0.5)

    # ---- layer 0: embedding gather (one-hot matmul) + positional add ------
    @pl.when(layer == 0)
    def _():
        tok = tok_ref[...]                                       # (bt, L, 1) int32
        vocab_iota = jax.lax.broadcasted_iota(jnp.int32, (bt, seq, 8), 2)
        onehot = (tok == vocab_iota).astype(jnp.float32)         # (bt, L, 8)
        xg = jnp.dot(onehot.reshape(bt * seq, 8), emb_ref[...],
                     preferred_element_type=jnp.float32)         # (bt*L, E)
        x0 = xg.reshape(bt, seq, E) + pos_ref[...]               # + pos (broadcast over batch)
        x_sc[...] = x0.reshape(bt * seq, E)

    x = x_sc[...]                                                # (bt*L, E) f32

    # ---- pre-norm multi-head self-attention (norm_first=True) ----
    h = _layernorm(x, ln1_w_ref[0], ln1_b_ref[0])
    qkv = jnp.dot(h.astype(jnp.bfloat16), in_w_ref[0],
                  preferred_element_type=jnp.float32) + in_b_ref[0]   # (bt*L, 3E)

    def head_stack(base):
        # Gather all heads of Q/K/V along the leading batch axis:
        # (bt*L, E) lane slices -> (num_heads*bt, L, dh).  Static slices +
        # axis-0 concat only; no minor-dim transposes.
        return jnp.concatenate(
            [qkv[:, base + hd * dh: base + (hd + 1) * dh].reshape(bt, seq, dh)
             for hd in range(num_heads)], axis=0)

    q = head_stack(0)
    k = head_stack(E)
    v = head_stack(2 * E)

    # Scores / softmax kept in f32 (tiny tensors; kernel is not MXU-bound).
    s = jnp.einsum("bqd,bkd->bqk", q, k,
                   preferred_element_type=jnp.float32) * scale        # (nh*bt, L, L)
    s = s - jnp.max(s, axis=-1, keepdims=True)
    p = jnp.exp(s)
    p = p / jnp.sum(p, axis=-1, keepdims=True)                        # exact divide
    ctx = jnp.einsum("bqk,bkd->bqd", p, v,
                     preferred_element_type=jnp.float32)              # (nh*bt, L, dh)

    # Re-concatenate heads along lanes once, then ONE K=E output projection.
    ctx = jnp.concatenate([ctx[hd * bt:(hd + 1) * bt] for hd in range(num_heads)],
                          axis=-1).reshape(bt * seq, E)
    attn = jnp.dot(ctx.astype(jnp.bfloat16), out_w_ref[0],
                   preferred_element_type=jnp.float32) + out_b_ref[0]
    x = x + attn

    # ---- pre-norm feed-forward (activation='relu') ----
    h2 = _layernorm(x, ln2_w_ref[0], ln2_b_ref[0])
    f = jnp.dot(h2.astype(jnp.bfloat16), ff1_w_ref[0],
                preferred_element_type=jnp.float32) + ff1_b_ref[0]
    f = jnp.maximum(f, 0.0)
    f = jnp.dot(f.astype(jnp.bfloat16), ff2_w_ref[0],
                preferred_element_type=jnp.float32) + ff2_b_ref[0]
    x = x + f
    x_sc[...] = x
    # TODO(synk): dropout layers are no-ops in eval / with dropout=0.0, so omitted.

    # ---- output heads fused into the last layer step (lane-dense slab) ----
    @pl.when(layer == last)
    def _():
        x3 = x.reshape(bt, seq, E)
        res = _layernorm(x, fn_w_ref[...], fn_b_ref[...])
        res3 = res.reshape(bt, seq, E)
        # policy on *pre-final-norm* x (matches PyTorch module); all L tokens,
        # wrapper slices to N_edges.
        pol = jnp.sum(x3 * pol_w_ref[...], axis=-1) + pol_b_ref[...]      # (bt, L)
        # value head: Linear(L*E -> 1) on row-major-flattened res, then tanh.
        v1 = jnp.sum(res3 * val_w_ref[...], axis=-1)                      # (bt, L)
        v2 = jnp.tanh(jnp.sum(v1, axis=-1, keepdims=True) + val_b_ref[...])  # (bt, 1)
        pieces = [pol, v2]
        if out_pad - seq - 1 > 0:
            pieces.append(jnp.zeros((bt, out_pad - seq - 1), jnp.float32))
        out_ref[...] = jnp.concatenate(pieces, axis=-1)                   # (bt, out_pad)


# --------------------------------------------------------------------------
# Wrapper helpers
# --------------------------------------------------------------------------
def _stack_layers(layers):
    E = layers[0]["ln1_w"].shape[0]
    F = layers[0]["ff1_w"].shape[0]

    def st(fn, dtype=jnp.float32):
        return jnp.stack([fn(lp).astype(dtype) for lp in layers], axis=0)

    return [
        st(lambda lp: lp["ln1_w"].reshape(1, E)),
        st(lambda lp: lp["ln1_b"].reshape(1, E)),
        st(lambda lp: lp["in_w"].T, jnp.bfloat16),      # (E, 3E)
        st(lambda lp: lp["in_b"].reshape(1, 3 * E)),
        st(lambda lp: lp["out_w"].T, jnp.bfloat16),     # (E, E)
        st(lambda lp: lp["out_b"].reshape(1, E)),
        st(lambda lp: lp["ln2_w"].reshape(1, E)),
        st(lambda lp: lp["ln2_b"].reshape(1, E)),
        st(lambda lp: lp["ff1_w"].T, jnp.bfloat16),     # (E, F)
        st(lambda lp: lp["ff1_b"].reshape(1, F)),
        st(lambda lp: lp["ff2_w"].T, jnp.bfloat16),     # (F, E)
        st(lambda lp: lp["ff2_b"].reshape(1, E)),
    ]


def _vmem_estimate_bytes(bt, L, E, F, n_heads):
    rows = bt * L
    act = rows * E * 4                                   # resident x scratch
    qkv = rows * 3 * E * 4                               # qkv temp
    ffn = rows * F * 4                                   # ffn hidden temp
    scores = 2 * n_heads * bt * L * max(L, 128) * 4      # scores + probs (lane-padded)
    wts = 2 * 2 * (3 * E * E + E * E + 2 * E * F)        # bf16, double-buffered
    io = 2 * bt * max(L, 8) * 128 * 4 + 2 * bt * 128 * 4  # tokens tile + out slab
    consts = (8 * E + 2 * L * E + 12 * E) * 4
    return act + qkv + ffn + scores + wts + io + consts


def _pick_batch_tile(B, L, E, F, n_heads):
    # Tile cap derived from a VMEM budget with headroom under v7x's 64 MiB
    # (v5e/v6e have 128 MiB and would also accept larger tiles).
    budget = 40 * 2 ** 20
    cap = 256
    while cap > 8 and _vmem_estimate_bytes(cap, L, E, F, n_heads) > budget:
        cap //= 2
    if B <= 8:
        return B
    # Prefer >= 2 batch tiles so the "parallel" axis can shard over v7x's 2 TCs.
    # Tiles must be a multiple of 8 (or the full batch) for the (8,128)
    # block-shape constraint on the (B, out_pad) output.
    best = 0
    t = 8
    while t <= min(cap, B // 2):
        if B % t == 0:
            best = t
        t += 8
    return best if best else B


# --------------------------------------------------------------------------
# Forward wrapper: single pallas_call
# --------------------------------------------------------------------------
def dots_and_boxes_forward(tokens, params, num_heads, n_edges):
    B, L = tokens.shape
    E = params["emb"].shape[1]
    F = params["layers"][0]["ff1_w"].shape[0]
    n_layers = len(params["layers"])

    Bt = _pick_batch_tile(B, L, E, F, num_heads)
    assert B % Bt == 0, "batch must be divisible by the batch tile"
    out_pad = max(128, ((L + 1 + 127) // 128) * 128)

    layer_args = _stack_layers(params["layers"])

    emb_pad = jnp.zeros((8, E), jnp.float32).at[:7].set(
        params["emb"].astype(jnp.float32))                 # vocab padded 7 -> 8
    pos = params["pos"][0].astype(jnp.float32)             # (L, E)
    hp = params["head"]
    head_args = [
        hp["fn_w"].reshape(1, E).astype(jnp.float32),
        hp["fn_b"].reshape(1, E).astype(jnp.float32),
        hp["pol_w"].reshape(1, 1, E).astype(jnp.float32),
        hp["pol_b"].reshape(1, 1).astype(jnp.float32),
        hp["val_w"].reshape(L, E).astype(jnp.float32),
        hp["val_b"].reshape(1, 1).astype(jnp.float32),
    ]
    tok3 = tokens.reshape(B, L, 1).astype(jnp.int32)

    def layer_spec(a):
        r = a.ndim
        return pl.BlockSpec((1,) + a.shape[1:], lambda b, l: (l,) + (0,) * (r - 1))

    def const_spec(a):
        r = a.ndim
        return pl.BlockSpec(a.shape, lambda b, l: (0,) * r)

    est = _vmem_estimate_bytes(Bt, L, E, F, num_heads)
    vmem_limit = int(min(60 * 2 ** 20, max(32 * 2 ** 20, 2 * est)))

    out = pl.pallas_call(
        functools.partial(_fused_forward_kernel, num_heads=num_heads,
                          bt=Bt, seq=L, out_pad=out_pad),
        out_shape=jax.ShapeDtypeStruct((B, out_pad), jnp.float32),
        grid_spec=pltpu.PrefetchScalarGridSpec(
            num_scalar_prefetch=0,
            grid=(B // Bt, n_layers),
            in_specs=[pl.BlockSpec((Bt, L, 1), lambda b, l: (b, 0, 0)),
                      const_spec(emb_pad),
                      const_spec(pos)]
                     + [layer_spec(a) for a in layer_args]
                     + [const_spec(a) for a in head_args],
            out_specs=pl.BlockSpec((Bt, out_pad), lambda b, l: (b, 0)),
            scratch_shapes=[pltpu.VMEM((Bt * L, E), jnp.float32)],
        ),
        compiler_params=pltpu.CompilerParams(
            dimension_semantics=("parallel", "arbitrary"),
            vmem_limit_bytes=vmem_limit,
        ),
    )(tok3, emb_pad, pos, *layer_args, *head_args)

    return {"policy": out[:, :n_edges], "value": out[:, L]}


# --------------------------------------------------------------------------
# Deterministic parameter init (mirrors nn.Module shapes)
# --------------------------------------------------------------------------
def init_params(key, num_rows, num_cols, attention_layers, embed_dim,
                feedforward_dim):
    L = 3 * num_rows * num_cols + num_rows + num_cols
    keys = jax.random.split(key, 3 + attention_layers)
    params = {
        "emb": jax.random.normal(keys[0], (7, embed_dim), jnp.float32),
        "pos": (embed_dim ** -0.5) * jax.random.normal(
            keys[1], (1, L, embed_dim), jnp.float32),
    }
    s = 0.1
    layers = []
    for i in range(attention_layers):
        lk = jax.random.split(keys[2 + i], 8)
        layers.append(dict(
            ln1_w=jnp.ones((embed_dim,), jnp.float32),
            ln1_b=jnp.zeros((embed_dim,), jnp.float32),
            in_w=s * jax.random.normal(lk[0], (3 * embed_dim, embed_dim), jnp.float32),
            in_b=s * jax.random.normal(lk[1], (3 * embed_dim,), jnp.float32),
            out_w=s * jax.random.normal(lk[2], (embed_dim, embed_dim), jnp.float32),
            out_b=s * jax.random.normal(lk[3], (embed_dim,), jnp.float32),
            ln2_w=jnp.ones((embed_dim,), jnp.float32),
            ln2_b=jnp.zeros((embed_dim,), jnp.float32),
            ff1_w=s * jax.random.normal(lk[4], (feedforward_dim, embed_dim), jnp.float32),
            ff1_b=s * jax.random.normal(lk[5], (feedforward_dim,), jnp.float32),
            ff2_w=s * jax.random.normal(lk[6], (embed_dim, feedforward_dim), jnp.float32),
            ff2_b=s * jax.random.normal(lk[7], (embed_dim,), jnp.float32),
        ))
    params["layers"] = layers
    hk = jax.random.split(keys[-1], 4)
    params["head"] = dict(
        fn_w=jnp.ones((embed_dim,), jnp.float32),
        fn_b=jnp.zeros((embed_dim,), jnp.float32),
        pol_w=s * jax.random.normal(hk[0], (1, embed_dim), jnp.float32),
        pol_b=s * jax.random.normal(hk[1], (1,), jnp.float32),
        val_w=s * jax.random.normal(hk[2], (1, L * embed_dim), jnp.float32),
        val_b=s * jax.random.normal(hk[3], (1,), jnp.float32),
    )
    return params


# --------------------------------------------------------------------------
# Pure-JAX reference (same math as the PyTorch module) for verification
# --------------------------------------------------------------------------
def reference_forward(tokens, params, num_heads, n_edges):
    x = params["emb"][tokens] + params["pos"][0]
    B, L, E = x.shape
    dh = E // num_heads
    for lp in params["layers"]:
        h = _layernorm(x, lp["ln1_w"], lp["ln1_b"])
        qkv = h @ lp["in_w"].T + lp["in_b"]
        q, k, v = jnp.split(qkv, 3, axis=-1)
        qh = q.reshape(B, L, num_heads, dh)
        kh = k.reshape(B, L, num_heads, dh)
        vh = v.reshape(B, L, num_heads, dh)
        s = jnp.einsum("blhd,bmhd->bhlm", qh, kh) / (dh ** 0.5)
        p = jax.nn.softmax(s, axis=-1)
        a = jnp.einsum("bhlm,bmhd->blhd", p, vh).reshape(B, L, E)
        x = x + a @ lp["out_w"].T + lp["out_b"]
        h2 = _layernorm(x, lp["ln2_w"], lp["ln2_b"])
        f = jax.nn.relu(h2 @ lp["ff1_w"].T + lp["ff1_b"]) @ lp["ff2_w"].T + lp["ff2_b"]
        x = x + f
    hp = params["head"]
    res = _layernorm(x, hp["fn_w"], hp["fn_b"])
    policy = (x[:, :n_edges, :] @ hp["pol_w"].T + hp["pol_b"])[..., 0]
    value = jnp.tanh(res.reshape(B, L * E) @ hp["val_w"].T + hp["val_b"])[..., 0]
    return policy, value


if __name__ == "__main__":
    # small config: num_rows=num_cols=2 -> L=16, N_edges=12
    num_rows, num_cols = 2, 2
    attention_layers = 2
    embed_dim = 32
    num_heads = 4
    feedforward_dim = 64
    batch = 2

    L = 3 * num_rows * num_cols + num_rows + num_cols
    n_edges = 2 * num_rows * num_cols + num_rows + num_cols

    key = jax.random.PRNGKey(0)
    pkey, tkey = jax.random.split(key)
    params = init_params(pkey, num_rows, num_cols, attention_layers,
                         embed_dim, feedforward_dim)
    tokens = jax.random.randint(tkey, (batch, L), 0, 7, dtype=jnp.int32)

    out = dots_and_boxes_forward(tokens, params, num_heads, n_edges)
    jax.block_until_ready(out)

    ref_policy, ref_value = reference_forward(tokens, params, num_heads, n_edges)
    assert out["policy"].shape == (batch, n_edges)
    assert out["value"].shape == (batch,)
    # Tolerance covers the bf16 weight / LHS matmuls (expected error O(1e-3));
    # real bugs would show up at O(0.1-1) error.
    assert jnp.allclose(out["policy"], ref_policy, atol=2e-2, rtol=2e-2)
    assert jnp.allclose(out["value"], ref_value, atol=2e-2, rtol=2e-2)
    print("KERNEL_OK")
</pallas_src>

<mosaic_0001>
module attributes {stable_mosaic.version = 11 : i64} {
  func.func @_fused_forward_kernel(%arg0: i32, %arg1: i32, %arg2: memref<2x16x1xi32, #tpu.memory_space<vmem>>, %arg3: memref<8x32xf32, #tpu.memory_space<vmem>>, %arg4: memref<16x32xf32, #tpu.memory_space<vmem>>, %arg5: memref<1x1x32xf32, #tpu.memory_space<vmem>>, %arg6: memref<1x1x32xf32, #tpu.memory_space<vmem>>, %arg7: memref<1x32x96xbf16, #tpu.memory_space<vmem>>, %arg8: memref<1x1x96xf32, #tpu.memory_space<vmem>>, %arg9: memref<1x32x32xbf16, #tpu.memory_space<vmem>>, %arg10: memref<1x1x32xf32, #tpu.memory_space<vmem>>, %arg11: memref<1x1x32xf32, #tpu.memory_space<vmem>>, %arg12: memref<1x1x32xf32, #tpu.memory_space<vmem>>, %arg13: memref<1x32x64xbf16, #tpu.memory_space<vmem>>, %arg14: memref<1x1x64xf32, #tpu.memory_space<vmem>>, %arg15: memref<1x64x32xbf16, #tpu.memory_space<vmem>>, %arg16: memref<1x1x32xf32, #tpu.memory_space<vmem>>, %arg17: memref<1x32xf32, #tpu.memory_space<vmem>>, %arg18: memref<1x32xf32, #tpu.memory_space<vmem>>, %arg19: memref<1x1x32xf32, #tpu.memory_space<vmem>>, %arg20: memref<1x1xf32, #tpu.memory_space<vmem>>, %arg21: memref<16x32xf32, #tpu.memory_space<vmem>>, %arg22: memref<1x1xf32, #tpu.memory_space<vmem>>, %arg23: memref<2x128xf32, #tpu.memory_space<vmem>>, %arg24: memref<32x32xf32, #tpu.memory_space<vmem>>) attributes {dimension_semantics = [#tpu.dimension_semantics<parallel>, #tpu.dimension_semantics<arbitrary>], iteration_bounds = array<i64: 1, 2>, scalar_prefetch = 0 : i64, scratch_operands = 1 : i64, tpu.core_type = #tpu.core_type<tc>, window_params = [{transform_indices = @transform_0, window_bounds = array<i64: 2, 16, 1>}, {pipeline_mode = #tpu.pipeline_mode<synchronous>, transform_indices = @transform_1, window_bounds = array<i64: 8, 32>}, {pipeline_mode = #tpu.pipeline_mode<synchronous>, transform_indices = @transform_2, window_bounds = array<i64: 16, 32>}, {transform_indices = @transform_3, window_bounds = array<i64: 1, 1, 32>}, {transform_indices = @transform_4, window_bounds = array<i64: 1, 1, 32>}, {transform_indices = @transform_5, window_bounds = array<i64: 1, 32, 96>}, {transform_indices = @transform_6, window_bounds = array<i64: 1, 1, 96>}, {transform_indices = @transform_7, window_bounds = array<i64: 1, 32, 32>}, {transform_indices = @transform_8, window_bounds = array<i64: 1, 1, 32>}, {transform_indices = @transform_9, window_bounds = array<i64: 1, 1, 32>}, {transform_indices = @transform_10, window_bounds = array<i64: 1, 1, 32>}, {transform_indices = @transform_11, window_bounds = array<i64: 1, 32, 64>}, {transform_indices = @transform_12, window_bounds = array<i64: 1, 1, 64>}, {transform_indices = @transform_13, window_bounds = array<i64: 1, 64, 32>}, {transform_indices = @transform_14, window_bounds = array<i64: 1, 1, 32>}, {pipeline_mode = #tpu.pipeline_mode<synchronous>, transform_indices = @transform_15, window_bounds = array<i64: 1, 32>}, {pipeline_mode = #tpu.pipeline_mode<synchronous>, transform_indices = @transform_16, window_bounds = array<i64: 1, 32>}, {pipeline_mode = #tpu.pipeline_mode<synchronous>, transform_indices = @transform_17, window_bounds = array<i64: 1, 1, 32>}, {pipeline_mode = #tpu.pipeline_mode<synchronous>, transform_indices = @transform_18, window_bounds = array<i64: 1, 1>}, {pipeline_mode = #tpu.pipeline_mode<synchronous>, transform_indices = @transform_19, window_bounds = array<i64: 16, 32>}, {pipeline_mode = #tpu.pipeline_mode<synchronous>, transform_indices = @transform_20, window_bounds = array<i64: 1, 1>}, {transform_indices = @transform_21, window_bounds = array<i64: 2, 128>}]} {
    %c0_i32 = arith.constant 0 : i32
    %0 = arith.cmpi eq, %arg1, %c0_i32 : i32
    %1 = arith.extui %0 : i1 to i32
    %c0_i32_0 = arith.constant 0 : i32
    %2 = arith.cmpi ne, %1, %c0_i32_0 : i32
    scf.if %2 {
      %c0_60 = arith.constant 0 : index
      %c0_61 = arith.constant 0 : index
      %c0_62 = arith.constant 0 : index
      %138 = vector.load %arg2[%c0_60, %c0_61, %c0_62] : memref<2x16x1xi32, #tpu.memory_space<vmem>>, vector<2x16x1xi32>
      %139 = tpu.iota {dimensions = array<i32: 2>} : vector<2x16x8xi32>
      %140 = vector.broadcast %138 : vector<2x16x1xi32> to vector<2x16x8xi32>
      %141 = arith.cmpi eq, %140, %139 : vector<2x16x8xi32>
      %142 = arith.extui %141 : vector<2x16x8xi1> to vector<2x16x8xi32>
      %143 = arith.sitofp %142 : vector<2x16x8xi32> to vector<2x16x8xf32>
      %144 = vector.shape_cast %143 : vector<2x16x8xf32> to vector<32x8xf32>
      %c0_63 = arith.constant 0 : index
      %c0_64 = arith.constant 0 : index
      %145 = vector.load %arg3[%c0_63, %c0_64] : memref<8x32xf32, #tpu.memory_space<vmem>>, vector<8x32xf32>
      %cst_65 = arith.constant dense<0.000000e+00> : vector<32x32xf32>
      %146 = tpu.matmul %144, %145, %cst_65 {dimension_numbers = #tpu.dot_dimension_numbers<[1], [0], [0], [1], [0, 0, 1, 1], [], []>} : vector<32x8xf32>, vector<8x32xf32>, vector<32x32xf32> -> vector<32x32xf32>
      %147 = vector.shape_cast %146 : vector<32x32xf32> to vector<2x16x32xf32>
      %c0_66 = arith.constant 0 : index
      %c0_67 = arith.constant 0 : index
      %148 = vector.load %arg4[%c0_66, %c0_67] : memref<16x32xf32, #tpu.memory_space<vmem>>, vector<16x32xf32>
      %149 = vector.shape_cast %148 : vector<16x32xf32> to vector<1x16x32xf32>
      %150 = vector.broadcast %149 : vector<1x16x32xf32> to vector<2x16x32xf32>
      %151 = arith.addf %147, %150 : vector<2x16x32xf32>
      %152 = vector.shape_cast %151 : vector<2x16x32xf32> to vector<32x32xf32>
      %c0_68 = arith.constant 0 : index
      %c0_69 = arith.constant 0 : index
      %153 = vector.load %arg24[%c0_68, %c0_69] : memref<32x32xf32, #tpu.memory_space<vmem>>, vector<32x32xf32>
      tpu.vector_store %arg24[%c0_68, %c0_69], %152 {strides = array<i32>} : memref<32x32xf32, #tpu.memory_space<vmem>>, vector<32x32xf32>,
    } else {
    }
    %c0 = arith.constant 0 : index
    %c0_1 = arith.constant 0 : index
    %3 = vector.load %arg24[%c0, %c0_1] : memref<32x32xf32, #tpu.memory_space<vmem>>, vector<32x32xf32>
    %c0_2 = arith.constant 0 : index
    %c0_3 = arith.constant 0 : index
    %c0_4 = arith.constant 0 : index
    %4 = vector.load %arg5[%c0_2, %c0_3, %c0_4] : memref<1x1x32xf32, #tpu.memory_space<vmem>>, vector<1x1x32xf32>
    %5 = vector.shape_cast %4 : vector<1x1x32xf32> to vector<1x32xf32>
    %c0_5 = arith.constant 0 : index
    %c0_6 = arith.constant 0 : index
    %c0_7 = arith.constant 0 : index
    %6 = vector.load %arg6[%c0_5, %c0_6, %c0_7] : memref<1x1x32xf32, #tpu.memory_space<vmem>>, vector<1x1x32xf32>
    %7 = vector.shape_cast %6 : vector<1x1x32xf32> to vector<1x32xf32>
    %cst = arith.constant dense<0.000000e+00> : vector<32xf32>
    %8 = vector.multi_reduction <add>, %3, %cst [1] : vector<32x32xf32> to vector<32xf32>
    %9 = vector.shape_cast %8 : vector<32xf32> to vector<32x1xf32>
    %cst_8 = arith.constant 3.200000e+01 : f32
    %10 = vector.broadcast %cst_8 : f32 to vector<32x1xf32>
    %11 = arith.divf %9, %10 : vector<32x1xf32>
    %12 = vector.broadcast %11 : vector<32x1xf32> to vector<32x32xf32>
    %13 = arith.subf %3, %12 : vector<32x32xf32>
    %14 = arith.mulf %13, %13 : vector<32x32xf32>
    %cst_9 = arith.constant dense<0.000000e+00> : vector<32xf32>
    %15 = vector.multi_reduction <add>, %14, %cst_9 [1] : vector<32x32xf32> to vector<32xf32>
    %16 = vector.shape_cast %15 : vector<32xf32> to vector<32x1xf32>
    %cst_10 = arith.constant 3.200000e+01 : f32
    %17 = vector.broadcast %cst_10 : f32 to vector<32x1xf32>
    %18 = arith.divf %16, %17 : vector<32x1xf32>
    %cst_11 = arith.constant 9.99999974E-6 : f32
    %19 = vector.broadcast %cst_11 : f32 to vector<32x1xf32>
    %20 = arith.addf %18, %19 : vector<32x1xf32>
    %21 = math.rsqrt %20 : vector<32x1xf32>
    %22 = vector.broadcast %21 : vector<32x1xf32> to vector<32x32xf32>
    %23 = arith.mulf %13, %22 : vector<32x32xf32>
    %24 = vector.broadcast %5 : vector<1x32xf32> to vector<32x32xf32>
    %25 = arith.mulf %23, %24 : vector<32x32xf32>
    %26 = vector.broadcast %7 : vector<1x32xf32> to vector<32x32xf32>
    %27 = arith.addf %25, %26 : vector<32x32xf32>
    %28 = arith.truncf %27 : vector<32x32xf32> to vector<32x32xbf16>
    %c0_12 = arith.constant 0 : index
    %c0_13 = arith.constant 0 : index
    %c0_14 = arith.constant 0 : index
    %29 = vector.load %arg7[%c0_12, %c0_13, %c0_14] : memref<1x32x96xbf16, #tpu.memory_space<vmem>>, vector<1x32x96xbf16>
    %30 = vector.shape_cast %29 : vector<1x32x96xbf16> to vector<32x96xbf16>
    %cst_15 = arith.constant dense<0.000000e+00> : vector<32x96xf32>
    %31 = tpu.matmul %28, %30, %cst_15 {dimension_numbers = #tpu.dot_dimension_numbers<[1], [0], [0], [1], [0, 0, 1, 1], [], []>} : vector<32x32xbf16>, vector<32x96xbf16>, vector<32x96xf32> -> vector<32x96xf32>
    %c0_16 = arith.constant 0 : index
    %c0_17 = arith.constant 0 : index
    %c0_18 = arith.constant 0 : index
    %32 = vector.load %arg8[%c0_16, %c0_17, %c0_18] : memref<1x1x96xf32, #tpu.memory_space<vmem>>, vector<1x1x96xf32>
    %33 = vector.shape_cast %32 : vector<1x1x96xf32> to vector<1x96xf32>
    %34 = vector.broadcast %33 : vector<1x96xf32> to vector<32x96xf32>
    %35 = arith.addf %31, %34 : vector<32x96xf32>
    %36 = vector.extract_strided_slice %35 {offsets = [0, 0], sizes = [32, 8], strides = [1, 1]} : vector<32x96xf32> to vector<32x8xf32>
    %37 = vector.shape_cast %36 : vector<32x8xf32> to vector<2x16x8xf32>
    %38 = vector.extract_strided_slice %35 {offsets = [0, 8], sizes = [32, 8], strides = [1, 1]} : vector<32x96xf32> to vector<32x8xf32>
    %39 = vector.shape_cast %38 : vector<32x8xf32> to vector<2x16x8xf32>
    %40 = vector.extract_strided_slice %35 {offsets = [0, 16], sizes = [32, 8], strides = [1, 1]} : vector<32x96xf32> to vector<32x8xf32>
    %41 = vector.shape_cast %40 : vector<32x8xf32> to vector<2x16x8xf32>
    %42 = vector.extract_strided_slice %35 {offsets = [0, 24], sizes = [32, 8], strides = [1, 1]} : vector<32x96xf32> to vector<32x8xf32>
    %43 = vector.shape_cast %42 : vector<32x8xf32> to vector<2x16x8xf32>
    %44 = tpu.concatenate %37, %39, %41, %43 in 0 : vector<2x16x8xf32>, vector<2x16x8xf32>, vector<2x16x8xf32>, vector<2x16x8xf32> -> vector<8x16x8xf32>
    %45 = vector.extract_strided_slice %35 {offsets = [0, 32], sizes = [32, 8], strides = [1, 1]} : vector<32x96xf32> to vector<32x8xf32>
    %46 = vector.shape_cast %45 : vector<32x8xf32> to vector<2x16x8xf32>
    %47 = vector.extract_strided_slice %35 {offsets = [0, 40], sizes = [32, 8], strides = [1, 1]} : vector<32x96xf32> to vector<32x8xf32>
    %48 = vector.shape_cast %47 : vector<32x8xf32> to vector<2x16x8xf32>
    %49 = vector.extract_strided_slice %35 {offsets = [0, 48], sizes = [32, 8], strides = [1, 1]} : vector<32x96xf32> to vector<32x8xf32>
    %50 = vector.shape_cast %49 : vector<32x8xf32> to vector<2x16x8xf32>
    %51 = vector.extract_strided_slice %35 {offsets = [0, 56], sizes = [32, 8], strides = [1, 1]} : vector<32x96xf32> to vector<32x8xf32>
    %52 = vector.shape_cast %51 : vector<32x8xf32> to vector<2x16x8xf32>
    %53 = tpu.concatenate %46, %48, %50, %52 in 0 : vector<2x16x8xf32>, vector<2x16x8xf32>, vector<2x16x8xf32>, vector<2x16x8xf32> -> vector<8x16x8xf32>
    %54 = vector.extract_strided_slice %35 {offsets = [0, 64], sizes = [32, 8], strides = [1, 1]} : vector<32x96xf32> to vector<32x8xf32>
    %55 = vector.shape_cast %54 : vector<32x8xf32> to vector<2x16x8xf32>
    %56 = vector.extract_strided_slice %35 {offsets = [0, 72], sizes = [32, 8], strides = [1, 1]} : vector<32x96xf32> to vector<32x8xf32>
    %57 = vector.shape_cast %56 : vector<32x8xf32> to vector<2x16x8xf32>
    %58 = vector.extract_strided_slice %35 {offsets = [0, 80], sizes = [32, 8], strides = [1, 1]} : vector<32x96xf32> to vector<32x8xf32>
    %59 = vector.shape_cast %58 : vector<32x8xf32> to vector<2x16x8xf32>
    %60 = vector.extract_strided_slice %35 {offsets = [0, 88], sizes = [32, 8], strides = [1, 1]} : vector<32x96xf32> to vector<32x8xf32>
    %61 = vector.shape_cast %60 : vector<32x8xf32> to vector<2x16x8xf32>
    %62 = tpu.concatenate %55, %57, %59, %61 in 0 : vector<2x16x8xf32>, vector<2x16x8xf32>, vector<2x16x8xf32>, vector<2x16x8xf32> -> vector<8x16x8xf32>
    "tpu.trace_start"() <{level = 10 : i32, message = "bqd,bkd->bqk"}> : () -> ()
    %cst_19 = arith.constant dense<0.000000e+00> : vector<8x16x16xf32>
    %63 = tpu.matmul %44, %53, %cst_19 {dimension_numbers = #tpu.dot_dimension_numbers<[2], [2], [1], [1], [0, 0, 0, 1, 1, 1], [0], [0]>} : vector<8x16x8xf32>, vector<8x16x8xf32>, vector<8x16x16xf32> -> vector<8x16x16xf32>
    "tpu.trace_stop"() : () -> ()
    %cst_20 = arith.constant 0.353553385 : f32
    %64 = vector.broadcast %cst_20 : f32 to vector<8x16x16xf32>
    %65 = arith.mulf %63, %64 : vector<8x16x16xf32>
    %cst_21 = arith.constant dense<0xFF800000> : vector<8x16xf32>
    %66 = vector.multi_reduction <maximumf>, %65, %cst_21 [2] : vector<8x16x16xf32> to vector<8x16xf32>
    %67 = vector.shape_cast %66 : vector<8x16xf32> to vector<8x16x1xf32>
    %68 = vector.broadcast %67 : vector<8x16x1xf32> to vector<8x16x16xf32>
    %69 = arith.subf %65, %68 : vector<8x16x16xf32>
    %70 = math.exp %69 : vector<8x16x16xf32>
    %cst_22 = arith.constant dense<0.000000e+00> : vector<8x16xf32>
    %71 = vector.multi_reduction <add>, %70, %cst_22 [2] : vector<8x16x16xf32> to vector<8x16xf32>
    %72 = vector.shape_cast %71 : vector<8x16xf32> to vector<8x16x1xf32>
    %73 = vector.broadcast %72 : vector<8x16x1xf32> to vector<8x16x16xf32>
    %74 = arith.divf %70, %73 : vector<8x16x16xf32>
    "tpu.trace_start"() <{level = 10 : i32, message = "bqk,bkd->bqd"}> : () -> ()
    %cst_23 = arith.constant dense<0.000000e+00> : vector<8x16x8xf32>
    %75 = tpu.matmul %74, %62, %cst_23 {dimension_numbers = #tpu.dot_dimension_numbers<[2], [1], [1], [2], [0, 0, 0, 1, 1, 2], [0], [0]>} : vector<8x16x16xf32>, vector<8x16x8xf32>, vector<8x16x8xf32> -> vector<8x16x8xf32>
    "tpu.trace_stop"() : () -> ()
    %76 = vector.extract_strided_slice %75 {offsets = [0, 0, 0], sizes = [2, 16, 8], strides = [1, 1, 1]} : vector<8x16x8xf32> to vector<2x16x8xf32>
    %77 = vector.extract_strided_slice %75 {offsets = [2, 0, 0], sizes = [2, 16, 8], strides = [1, 1, 1]} : vector<8x16x8xf32> to vector<2x16x8xf32>
    %78 = vector.extract_strided_slice %75 {offsets = [4, 0, 0], sizes = [2, 16, 8], strides = [1, 1, 1]} : vector<8x16x8xf32> to vector<2x16x8xf32>
    %79 = vector.extract_strided_slice %75 {offsets = [6, 0, 0], sizes = [2, 16, 8], strides = [1, 1, 1]} : vector<8x16x8xf32> to vector<2x16x8xf32>
    %80 = tpu.concatenate %76, %77, %78, %79 in 2 : vector<2x16x8xf32>, vector<2x16x8xf32>, vector<2x16x8xf32>, vector<2x16x8xf32> -> vector<2x16x32xf32>
    %81 = vector.shape_cast %80 : vector<2x16x32xf32> to vector<32x32xf32>
    %82 = arith.truncf %81 : vector<32x32xf32> to vector<32x32xbf16>
    %c0_24 = arith.constant 0 : index
    %c0_25 = arith.constant 0 : index
    %c0_26 = arith.constant 0 : index
    %83 = vector.load %arg9[%c0_24, %c0_25, %c0_26] : memref<1x32x32xbf16, #tpu.memory_space<vmem>>, vector<1x32x32xbf16>
    %84 = vector.shape_cast %83 : vector<1x32x32xbf16> to vector<32x32xbf16>
    %cst_27 = arith.constant dense<0.000000e+00> : vector<32x32xf32>
    %85 = tpu.matmul %82, %84, %cst_27 {dimension_numbers = #tpu.dot_dimension_numbers<[1], [0], [0], [1], [0, 0, 1, 1], [], []>} : vector<32x32xbf16>, vector<32x32xbf16>, vector<32x32xf32> -> vector<32x32xf32>
    %c0_28 = arith.constant 0 : index
    %c0_29 = arith.constant 0 : index
    %c0_30 = arith.constant 0 : index
    %86 = vector.load %arg10[%c0_28, %c0_29, %c0_30] : memref<1x1x32xf32, #tpu.memory_space<vmem>>, vector<1x1x32xf32>
    %87 = vector.shape_cast %86 : vector<1x1x32xf32> to vector<1x32xf32>
    %88 = vector.broadcast %87 : vector<1x32xf32> to vector<32x32xf32>
    %89 = arith.addf %85, %88 : vector<32x32xf32>
    %90 = arith.addf %3, %89 : vector<32x32xf32>
    %c0_31 = arith.constant 0 : index
    %c0_32 = arith.constant 0 : index
    %c0_33 = arith.constant 0 : index
    %91 = vector.load %arg11[%c0_31, %c0_32, %c0_33] : memref<1x1x32xf32, #tpu.memory_space<vmem>>, vector<1x1x32xf32>
    %92 = vector.shape_cast %91 : vector<1x1x32xf32> to vector<1x32xf32>
    %c0_34 = arith.constant 0 : index
    %c0_35 = arith.constant 0 : index
    %c0_36 = arith.constant 0 : index
    %93 = vector.load %arg12[%c0_34, %c0_35, %c0_36] : memref<1x1x32xf32, #tpu.memory_space<vmem>>, vector<1x1x32xf32>
    %94 = vector.shape_cast %93 : vector<1x1x32xf32> to vector<1x32xf32>
    %cst_37 = arith.constant dense<0.000000e+00> : vector<32xf32>
    %95 = vector.multi_reduction <add>, %90, %cst_37 [1] : vector<32x32xf32> to vector<32xf32>
    %96 = vector.shape_cast %95 : vector<32xf32> to vector<32x1xf32>
    %cst_38 = arith.constant 3.200000e+01 : f32
    %97 = vector.broadcast %cst_38 : f32 to vector<32x1xf32>
    %98 = arith.divf %96, %97 : vector<32x1xf32>
    %99 = vector.broadcast %98 : vector<32x1xf32> to vector<32x32xf32>
    %100 = arith.subf %90, %99 : vector<32x32xf32>
    %101 = arith.mulf %100, %100 : vector<32x32xf32>
    %cst_39 = arith.constant dense<0.000000e+00> : vector<32xf32>
    %102 = vector.multi_reduction <add>, %101, %cst_39 [1] : vector<32x32xf32> to vector<32xf32>
    %103 = vector.shape_cast %102 : vector<32xf32> to vector<32x1xf32>
    %cst_40 = arith.constant 3.200000e+01 : f32
    %104 = vector.broadcast %cst_40 : f32 to vector<32x1xf32>
    %105 = arith.divf %103, %104 : vector<32x1xf32>
    %cst_41 = arith.constant 9.99999974E-6 : f32
    %106 = vector.broadcast %cst_41 : f32 to vector<32x1xf32>
    %107 = arith.addf %105, %106 : vector<32x1xf32>
    %108 = math.rsqrt %107 : vector<32x1xf32>
    %109 = vector.broadcast %108 : vector<32x1xf32> to vector<32x32xf32>
    %110 = arith.mulf %100, %109 : vector<32x32xf32>
    %111 = vector.broadcast %92 : vector<1x32xf32> to vector<32x32xf32>
    %112 = arith.mulf %110, %111 : vector<32x32xf32>
    %113 = vector.broadcast %94 : vector<1x32xf32> to vector<32x32xf32>
    %114 = arith.addf %112, %113 : vector<32x32xf32>
    %115 = arith.truncf %114 : vector<32x32xf32> to vector<32x32xbf16>
    %c0_42 = arith.constant 0 : index
    %c0_43 = arith.constant 0 : index
    %c0_44 = arith.constant 0 : index
    %116 = vector.load %arg13[%c0_42, %c0_43, %c0_44] : memref<1x32x64xbf16, #tpu.memory_space<vmem>>, vector<1x32x64xbf16>
    %117 = vector.shape_cast %116 : vector<1x32x64xbf16> to vector<32x64xbf16>
    %cst_45 = arith.constant dense<0.000000e+00> : vector<32x64xf32>
    %118 = tpu.matmul %115, %117, %cst_45 {dimension_numbers = #tpu.dot_dimension_numbers<[1], [0], [0], [1], [0, 0, 1, 1], [], []>} : vector<32x32xbf16>, vector<32x64xbf16>, vector<32x64xf32> -> vector<32x64xf32>
    %c0_46 = arith.constant 0 : index
    %c0_47 = arith.constant 0 : index
    %c0_48 = arith.constant 0 : index
    %119 = vector.load %arg14[%c0_46, %c0_47, %c0_48] : memref<1x1x64xf32, #tpu.memory_space<vmem>>, vector<1x1x64xf32>
    %120 = vector.shape_cast %119 : vector<1x1x64xf32> to vector<1x64xf32>
    %121 = vector.broadcast %120 : vector<1x64xf32> to vector<32x64xf32>
    %122 = arith.addf %118, %121 : vector<32x64xf32>
    %cst_49 = arith.constant 0.000000e+00 : f32
    %123 = vector.broadcast %cst_49 : f32 to vector<32x64xf32>
    %124 = arith.maximumf %122, %123 : vector<32x64xf32>
    %125 = arith.truncf %124 : vector<32x64xf32> to vector<32x64xbf16>
    %c0_50 = arith.constant 0 : index
    %c0_51 = arith.constant 0 : index
    %c0_52 = arith.constant 0 : index
    %126 = vector.load %arg15[%c0_50, %c0_51, %c0_52] : memref<1x64x32xbf16, #tpu.memory_space<vmem>>, vector<1x64x32xbf16>
    %127 = vector.shape_cast %126 : vector<1x64x32xbf16> to vector<64x32xbf16>
    %cst_53 = arith.constant dense<0.000000e+00> : vector<32x32xf32>
    %128 = tpu.matmul %125, %127, %cst_53 {dimension_numbers = #tpu.dot_dimension_numbers<[1], [0], [0], [1], [0, 0, 1, 1], [], []>} : vector<32x64xbf16>, vector<64x32xbf16>, vector<32x32xf32> -> vector<32x32xf32>
    %c0_54 = arith.constant 0 : index
    %c0_55 = arith.constant 0 : index
    %c0_56 = arith.constant 0 : index
    %129 = vector.load %arg16[%c0_54, %c0_55, %c0_56] : memref<1x1x32xf32, #tpu.memory_space<vmem>>, vector<1x1x32xf32>
    %130 = vector.shape_cast %129 : vector<1x1x32xf32> to vector<1x32xf32>
    %131 = vector.broadcast %130 : vector<1x32xf32> to vector<32x32xf32>
    %132 = arith.addf %128, %131 : vector<32x32xf32>
    %133 = arith.addf %90, %132 : vector<32x32xf32>
    %c0_57 = arith.constant 0 : index
    %c0_58 = arith.constant 0 : index
    %134 = vector.load %arg24[%c0_57, %c0_58] : memref<32x32xf32, #tpu.memory_space<vmem>>, vector<32x32xf32>
    tpu.vector_store %arg24[%c0_57, %c0_58], %133 {strides = array<i32>} : memref<32x32xf32, #tpu.memory_space<vmem>>, vector<32x32xf32>,
    %c1_i32 = arith.constant 1 : i32
    %135 = arith.cmpi eq, %arg1, %c1_i32 : i32
    %136 = arith.extui %135 : i1 to i32
    %c0_i32_59 = arith.constant 0 : i32
    %137 = arith.cmpi ne, %136, %c0_i32_59 : i32
    scf.if %137 {
      %138 = vector.shape_cast %133 : vector<32x32xf32> to vector<2x16x32xf32>
      %c0_60 = arith.constant 0 : index
      %c0_61 = arith.constant 0 : index
      %139 = vector.load %arg17[%c0_60, %c0_61] : memref<1x32xf32, #tpu.memory_space<vmem>>, vector<1x32xf32>
      %c0_62 = arith.constant 0 : index
      %c0_63 = arith.constant 0 : index
      %140 = vector.load %arg18[%c0_62, %c0_63] : memref<1x32xf32, #tpu.memory_space<vmem>>, vector<1x32xf32>
      %cst_64 = arith.constant dense<0.000000e+00> : vector<32xf32>
      %141 = vector.multi_reduction <add>, %133, %cst_64 [1] : vector<32x32xf32> to vector<32xf32>
      %142 = vector.shape_cast %141 : vector<32xf32> to vector<32x1xf32>
      %cst_65 = arith.constant 3.200000e+01 : f32
      %143 = vector.broadcast %cst_65 : f32 to vector<32x1xf32>
      %144 = arith.divf %142, %143 : vector<32x1xf32>
      %145 = vector.broadcast %144 : vector<32x1xf32> to vector<32x32xf32>
      %146 = arith.subf %133, %145 : vector<32x32xf32>
      %147 = arith.mulf %146, %146 : vector<32x32xf32>
      %cst_66 = arith.constant dense<0.000000e+00> : vector<32xf32>
      %148 = vector.multi_reduction <add>, %147, %cst_66 [1] : vector<32x32xf32> to vector<32xf32>
      %149 = vector.shape_cast %148 : vector<32xf32> to vector<32x1xf32>
      %cst_67 = arith.constant 3.200000e+01 : f32
      %150 = vector.broadcast %cst_67 : f32 to vector<32x1xf32>
      %151 = arith.divf %149, %150 : vector<32x1xf32>
      %cst_68 = arith.constant 9.99999974E-6 : f32
      %152 = vector.broadcast %cst_68 : f32 to vector<32x1xf32>
      %153 = arith.addf %151, %152 : vector<32x1xf32>
      %154 = math.rsqrt %153 : vector<32x1xf32>
      %155 = vector.broadcast %154 : vector<32x1xf32> to vector<32x32xf32>
      %156 = arith.mulf %146, %155 : vector<32x32xf32>
      %157 = vector.broadcast %139 : vector<1x32xf32> to vector<32x32xf32>
      %158 = arith.mulf %156, %157 : vector<32x32xf32>
      %159 = vector.broadcast %140 : vector<1x32xf32> to vector<32x32xf32>
      %160 = arith.addf %158, %159 : vector<32x32xf32>
      %161 = vector.shape_cast %160 : vector<32x32xf32> to vector<2x16x32xf32>
      %c0_69 = arith.constant 0 : index
      %c0_70 = arith.constant 0 : index
      %c0_71 = arith.constant 0 : index
      %162 = vector.load %arg19[%c0_69, %c0_70, %c0_71] : memref<1x1x32xf32, #tpu.memory_space<vmem>>, vector<1x1x32xf32>
      %163 = vector.broadcast %162 : vector<1x1x32xf32> to vector<2x16x32xf32>
      %164 = arith.mulf %138, %163 : vector<2x16x32xf32>
      %cst_72 = arith.constant dense<0.000000e+00> : vector<2x16xf32>
      %165 = vector.multi_reduction <add>, %164, %cst_72 [2] : vector<2x16x32xf32> to vector<2x16xf32>
      %c0_73 = arith.constant 0 : index
      %c0_74 = arith.constant 0 : index
      %166 = vector.load %arg20[%c0_73, %c0_74] : memref<1x1xf32, #tpu.memory_space<vmem>>, vector<1x1xf32>
      %167 = vector.broadcast %166 : vector<1x1xf32> to vector<2x16xf32>
      %168 = arith.addf %165, %167 : vector<2x16xf32>
      %c0_75 = arith.constant 0 : index
      %c0_76 = arith.constant 0 : index
      %169 = vector.load %arg21[%c0_75, %c0_76] : memref<16x32xf32, #tpu.memory_space<vmem>>, vector<16x32xf32>
      %170 = vector.shape_cast %169 : vector<16x32xf32> to vector<1x16x32xf32>
      %171 = vector.broadcast %170 : vector<1x16x32xf32> to vector<2x16x32xf32>
      %172 = arith.mulf %161, %171 : vector<2x16x32xf32>
      %cst_77 = arith.constant dense<0.000000e+00> : vector<2x16xf32>
      %173 = vector.multi_reduction <add>, %172, %cst_77 [2] : vector<2x16x32xf32> to vector<2x16xf32>
      %cst_78 = arith.constant dense<0.000000e+00> : vector<2xf32>
      %174 = vector.multi_reduction <add>, %173, %cst_78 [1] : vector<2x16xf32> to vector<2xf32>
      %175 = vector.shape_cast %174 : vector<2xf32> to vector<2x1xf32>
      %c0_79 = arith.constant 0 : index
      %c0_80 = arith.constant 0 : index
      %176 = vector.load %arg22[%c0_79, %c0_80] : memref<1x1xf32, #tpu.memory_space<vmem>>, vector<1x1xf32>
      %177 = vector.broadcast %176 : vector<1x1xf32> to vector<2x1xf32>
      %178 = arith.addf %175, %177 : vector<2x1xf32>
      %179 = math.tanh %178 : vector<2x1xf32>
      %cst_81 = arith.constant 0.000000e+00 : f32
      %180 = vector.broadcast %cst_81 : f32 to vector<2x111xf32>
      %181 = tpu.concatenate %168, %179, %180 in 1 : vector<2x16xf32>, vector<2x1xf32>, vector<2x111xf32> -> vector<2x128xf32>
      %c0_82 = arith.constant 0 : index
      %c0_83 = arith.constant 0 : index
      %182 = vector.load %arg23[%c0_82, %c0_83] : memref<2x128xf32, #tpu.memory_space<vmem>>, vector<2x128xf32>
      tpu.vector_store %arg23[%c0_82, %c0_83], %181 {strides = array<i32>} : memref<2x128xf32, #tpu.memory_space<vmem>>, vector<2x128xf32>,
    } else {
    }
    return
  }
  func.func @transform_0(%arg0: i32, %arg1: i32) -> (i32, i32, i32) {
    %c0_i32 = arith.constant 0 : i32
    %c0_i32_0 = arith.constant 0 : i32
    %c0_i32_1 = arith.constant 0 : i32
    return %arg0, %c0_i32, %c0_i32_0 : i32, i32, i32
  }
  func.func @transform_1(%arg0: i32, %arg1: i32) -> (i32, i32) {
    %c0_i32 = arith.constant 0 : i32
    %c0_i32_0 = arith.constant 0 : i32
    %c0_i32_1 = arith.constant 0 : i32
    return %c0_i32, %c0_i32_0 : i32, i32
  }
  func.func @transform_2(%arg0: i32, %arg1: i32) -> (i32, i32) {
    %c0_i32 = arith.constant 0 : i32
    %c0_i32_0 = arith.constant 0 : i32
    %c0_i32_1 = arith.constant 0 : i32
    return %c0_i32, %c0_i32_0 : i32, i32
  }
  func.func @transform_3(%arg0: i32, %arg1: i32) -> (i32, i32, i32) {
    %c0_i32 = arith.constant 0 : i32
    %c0_i32_0 = arith.constant 0 : i32
    %c0_i32_1 = arith.constant 0 : i32
    return %arg1, %c0_i32, %c0_i32_0 : i32, i32, i32
  }
  func.func @transform_4(%arg0: i32, %arg1: i32) -> (i32, i32, i32) {
    %c0_i32 = arith.constant 0 : i32
    %c0_i32_0 = arith.constant 0 : i32
    %c0_i32_1 = arith.constant 0 : i32
    return %arg1, %c0_i32, %c0_i32_0 : i32, i32, i32
  }
  func.func @transform_5(%arg0: i32, %arg1: i32) -> (i32, i32, i32) {
    %c0_i32 = arith.constant 0 : i32
    %c0_i32_0 = arith.constant 0 : i32
    %c0_i32_1 = arith.constant 0 : i32
    return %arg1, %c0_i32, %c0_i32_0 : i32, i32, i32
  }
  func.func @transform_6(%arg0: i32, %arg1: i32) -> (i32, i32, i32) {
    %c0_i32 = arith.constant 0 : i32
    %c0_i32_0 = arith.constant 0 : i32
    %c0_i32_1 = arith.constant 0 : i32
    return %arg1, %c0_i32, %c0_i32_0 : i32, i32, i32
  }
  func.func @transform_7(%arg0: i32, %arg1: i32) -> (i32, i32, i32) {
    %c0_i32 = arith.constant 0 : i32
    %c0_i32_0 = arith.constant 0 : i32
    %c0_i32_1 = arith.constant 0 : i32
    return %arg1, %c0_i32, %c0_i32_0 : i32, i32, i32
  }
  func.func @transform_8(%arg0: i32, %arg1: i32) -> (i32, i32, i32) {
    %c0_i32 = arith.constant 0 : i32
    %c0_i32_0 = arith.constant 0 : i32
    %c0_i32_1 = arith.constant 0 : i32
    return %arg1, %c0_i32, %c0_i32_0 : i32, i32, i32
  }
  func.func @transform_9(%arg0: i32, %arg1: i32) -> (i32, i32, i32) {
    %c0_i32 = arith.constant 0 : i32
    %c0_i32_0 = arith.constant 0 : i32
    %c0_i32_1 = arith.constant 0 : i32
    return %arg1, %c0_i32, %c0_i32_0 : i32, i32, i32
  }
  func.func @transform_10(%arg0: i32, %arg1: i32) -> (i32, i32, i32) {
    %c0_i32 = arith.constant 0 : i32
    %c0_i32_0 = arith.constant 0 : i32
    %c0_i32_1 = arith.constant 0 : i32
    return %arg1, %c0_i32, %c0_i32_0 : i32, i32, i32
  }
  func.func @transform_11(%arg0: i32, %arg1: i32) -> (i32, i32, i32) {
    %c0_i32 = arith.constant 0 : i32
    %c0_i32_0 = arith.constant 0 : i32
    %c0_i32_1 = arith.constant 0 : i32
    return %arg1, %c0_i32, %c0_i32_0 : i32, i32, i32
  }
  func.func @transform_12(%arg0: i32, %arg1: i32) -> (i32, i32, i32) {
    %c0_i32 = arith.constant 0 : i32
    %c0_i32_0 = arith.constant 0 : i32
    %c0_i32_1 = arith.constant 0 : i32
    return %arg1, %c0_i32, %c0_i32_0 : i32, i32, i32
  }
  func.func @transform_13(%arg0: i32, %arg1: i32) -> (i32, i32, i32) {
    %c0_i32 = arith.constant 0 : i32
    %c0_i32_0 = arith.constant 0 : i32
    %c0_i32_1 = arith.constant 0 : i32
    return %arg1, %c0_i32, %c0_i32_0 : i32, i32, i32
  }
  func.func @transform_14(%arg0: i32, %arg1: i32) -> (i32, i32, i32) {
    %c0_i32 = arith.constant 0 : i32
    %c0_i32_0 = arith.constant 0 : i32
    %c0_i32_1 = arith.constant 0 : i32
    return %arg1, %c0_i32, %c0_i32_0 : i32, i32, i32
  }
  func.func @transform_15(%arg0: i32, %arg1: i32) -> (i32, i32) {
    %c0_i32 = arith.constant 0 : i32
    %c0_i32_0 = arith.constant 0 : i32
    %c0_i32_1 = arith.constant 0 : i32
    return %c0_i32, %c0_i32_0 : i32, i32
  }
  func.func @transform_16(%arg0: i32, %arg1: i32) -> (i32, i32) {
    %c0_i32 = arith.constant 0 : i32
    %c0_i32_0 = arith.constant 0 : i32
    %c0_i32_1 = arith.constant 0 : i32
    return %c0_i32, %c0_i32_0 : i32, i32
  }
  func.func @transform_17(%arg0: i32, %arg1: i32) -> (i32, i32, i32) {
    %c0_i32 = arith.constant 0 : i32
    %c0_i32_0 = arith.constant 0 : i32
    %c0_i32_1 = arith.constant 0 : i32
    %c0_i32_2 = arith.constant 0 : i32
    return %c0_i32, %c0_i32_0, %c0_i32_1 : i32, i32, i32
  }
  func.func @transform_18(%arg0: i32, %arg1: i32) -> (i32, i32) {
    %c0_i32 = arith.constant 0 : i32
    %c0_i32_0 = arith.constant 0 : i32
    %c0_i32_1 = arith.constant 0 : i32
    return %c0_i32, %c0_i32_0 : i32, i32
  }
  func.func @transform_19(%arg0: i32, %arg1: i32) -> (i32, i32) {
    %c0_i32 = arith.constant 0 : i32
    %c0_i32_0 = arith.constant 0 : i32
    %c0_i32_1 = arith.constant 0 : i32
    return %c0_i32, %c0_i32_0 : i32, i32
  }
  func.func @transform_20(%arg0: i32, %arg1: i32) -> (i32, i32) {
    %c0_i32 = arith.constant 0 : i32
    %c0_i32_0 = arith.constant 0 : i32
    %c0_i32_1 = arith.constant 0 : i32
    return %c0_i32, %c0_i32_0 : i32, i32
  }
  func.func @transform_21(%arg0: i32, %arg1: i32) -> (i32, i32) {
    %c0_i32 = arith.constant 0 : i32
    %c0_i32_0 = arith.constant 0 : i32
    return %arg0, %c0_i32 : i32, i32
  }
}

</mosaic_0001>

<bundles_post_ra>
// kernel: tpu_custom_call.1
= control target key start
LH: loop header
LB: loop body
LE: loop exit
PB: predicated region body
PF: predicated region fallthrough
CT: control target
= control target key end

     0   :  { %s5579_s0 = inlined_call_operand.vmem [shape: s32[2,16,1], index: 0, kind: input, shape index: {}]   ;;  %s5580_s1 = inlined_call_operand.hbm [shape: f32[8,32], index: 1, kind: input, shape index: {}]   ;;  %s5581_s2 = inlined_call_operand.vmem [shape: f32[16,32], index: 2, kind: input, shape index: {}]   ;;  %s5582_s3 = inlined_call_operand.hbm [shape: f32[2,1,32], index: 3, kind: input, shape index: {}]   ;;  %s5583_s4 = inlined_call_operand.hbm [shape: f32[2,1,32], index: 4, kind: input, shape index: {}]   ;;  %s5584_s5 = inlined_call_operand.vmem [shape: bf16[2,32,96], index: 5, kind: input, shape index: {}]   ;;  %s5585_s6 = inlined_call_operand.hbm [shape: f32[2,1,96], index: 6, kind: input, shape index: {}]   ;;  %s5586_s7 = inlined_call_operand.vmem [shape: bf16[2,32,32], index: 7, kind: input, shape index: {}]   ;;  %s5587_s8 = inlined_call_operand.vmem [shape: f32[2,1,32], index: 8, kind: input, shape index: {}]   ;;  %s5588_s9 = inlined_call_operand.vmem [shape: f32[2,1,32], index: 9, kind: input, shape index: {}]   ;;  %s5589_s10 = inlined_call_operand.vmem [shape: f32[2,1,32], index: 10, kind: input, shape index: {}]   ;;  %s5590_s11 = inlined_call_operand.vmem [shape: bf16[2,32,64], index: 11, kind: input, shape index: {}]   ;;  %s5591_s12 = inlined_call_operand.vmem [shape: f32[2,1,64], index: 12, kind: input, shape index: {}]   ;;  %s5592_s13 = inlined_call_operand.vmem [shape: bf16[2,64,32], index: 13, kind: input, shape index: {}]   ;;  %s5593_s14 = inlined_call_operand.vmem [shape: f32[2,1,32], index: 14, kind: input, shape index: {}]   ;;  %s5594_s15 = inlined_call_operand.vmem [shape: f32[1,32], index: 15, kind: input, shape index: {}]   ;;  %s5595_s16 = inlined_call_operand.vmem [shape: f32[1,32], index: 16, kind: input, shape index: {}]   ;;  %s5596_s17 = inlined_call_operand.vmem [shape: f32[1,1,32], index: 17, kind: input, shape index: {}]   ;;  %s5597_s18 = inlined_call_operand.<no memory space> [shape: f32[1,1], index: 18, kind: input, shape index: {}]   ;;  %s5598_s19 = inlined_call_operand.vmem [shape: f32[16,32], index: 19, kind: input, shape index: {}]   ;;  %s5599_s21 = inlined_call_operand.hbm [shape: f32[2,128], index: 21, kind: output, shape index: {}]   ;;  %s5600_s20 = inlined_call_operand.<no memory space> [shape: f32[1,1], index: 20, kind: input, shape index: {}]  }
   0x1   :  { %5623 = sst [smem:[#allocation23_spill]] %s5579_s0  ;;  %v26_v0 = vstv %s5597_s18  ;;  %v28_v1 = vstv %s5600_s20 }
   0x2   :  { %5624 = sst [smem:[#allocation24_spill]] %s5580_s1  ;;  %27 = vst [vmem:[#allocation3] sm:$0x1] %v26_v0  ;;  %29 = vst [vmem:[#allocation4] sm:$0x1] %v28_v1 }
   0x3   :  { %5625 = sst [smem:[#allocation25_spill]] %s5581_s2 }
   0x4   :  { %5626 = sst [smem:[#allocation26_spill]] %s5582_s3 }
   0x5   :  { %5627 = sst [smem:[#allocation27_spill]] %s5583_s4 }
   0x6   :  { %5628 = sst [smem:[#allocation28_spill]] %s5584_s5 }
   0x7   :  { %5629 = sst [smem:[#allocation29_spill]] %s5585_s6 }
   0x8   :  { %5630 = sst [smem:[#allocation30_spill]] %s5586_s7 }
   0x9   :  { %5631 = sst [smem:[#allocation31_spill]] %s5592_s13 }
   0xa   :  { %5632 = sst [smem:[#allocation32_spill]] %s5593_s14 }
   0xb   :  { %5633 = sst [smem:[#allocation33_spill]] %s5594_s15 }
   0xc   :  { %5634 = sst [smem:[#allocation34_spill]] %s5595_s16 }
   0xd   :  { %5635 = sst [smem:[#allocation35_spill]] %s5596_s17 }
   0xe   :  { %5636 = sst [smem:[#allocation36_spill]] %s5598_s19 }
   0xf   :  { %5637 = sst [smem:[#allocation37_spill]] %s5599_s21 }
  0x10   :  { %30 = vsyncpa [#allocation6], 0 }
  0x11   :  { %31 = vsyncpa [#allocation9], 0 }
  0x12   :  { %33 = vsyncpa [#allocation9 + $0x1], 0 }
  0x13   :  { %34 = vsyncpa [#allocation12], 0 }
  0x14   :  { %36 = vsyncpa [#allocation12 + $0x1], 0 }
  0x15   :  { %37 = vsyncpa [#allocation7], 0  ;;  %s4783_s3 = smov 0   ;;  %s4785_s28 = smov 0  }
  0x16   :  { %s4787_s29 = smov 0   ;;  %s4789_s0 = smov 0  }
  0x17   :  { %s4791_s18 = smov 0   ;;  %s4793_s4 = smov 0  }
  0x18 LB: > { %5638 = sst [smem:[#allocation18_spill]] %s4636_s29  ;;  %s52_s20 = sadd.s32 1, %s4644_s18  ;;  %s4648_s4 = sphi %s4793_s4, %s43_s4   ;;  %s4644_s18 = sphi %s4791_s18, %s5687_s18   ;;  %s4640_s0 = sphi %s4789_s0, %s5683_s0   ;;  %s4636_s29 = sphi %s4787_s29, %s5682_s29   ;;  %s4632_s28 = sphi %s4785_s28, %s5686_s28   ;;  %s4628_s3 = sphi %s4783_s3, %s5685_s3  }
  0x19   : > { %5639 = sst [smem:[#allocation19_spill]] %s4644_s18  ;;  %s130_s30 = sadd.s32 1, %s4636_s29 }
  0x1a   : > { %5640 = sst [smem:[#allocation20_spill]] %s4648_s4  ;;  %p53_p0 = scmp.ge.s32.totalorder %s52_s20, 2 }
  0x1b   : > { %p137_p1 = scmp.ne.s32.totalorder %s4636_s29, %s4632_s28  ;;  %p138_p2 = scmp.eq.s32.totalorder %s4648_s4, 0 }
  0x1c   : > { %s5689_s20 = smov (%p53_p0, %s52_s20), 0  ;;  %p4158_p4 = scmp.lt.s32.totalorder %s4648_s4, 2 }
  0x1d   : > { %5641 = sst [smem:[#allocation21_spill]] %s5689_s20  ;;  %p139_p3 = por %p138_p2, %p137_p1 }
  0x1e   : > { %s127_s5 = ssub.s32 %s4644_s18, %s5689_s20  ;;  %s647_s22 = sand.u32 1, %s4648_s4  }
  0x1f   : > { %p128_p5 = scmp.eq.s32.totalorder %s127_s5, 0  ;;  %s4825_s23 = sand.u32 1, %s4636_s29  }
  0x20   : > { %s4828_s1 = sshll.u32 %s4644_s18, 4  ;;  %s5643_s26 = sld [smem:[#allocation26_spill]] }
  0x21   : > { %s4831_s24 = scalar_select %p128_p5, %s4636_s29, %s130_s30  }
  0x22   : > { %s650_s20 = scalar_lea.vmem [#allocation8], %s4825_s23  ;;  %p4840_p6 = pnand %p4158_p4, %p139_p3 }
  0x23   : > { %5642 = sst [smem:[#allocation22_spill]] %s4831_s24  ;;  %s657_s21 = sshll.u32 %s650_s20, 4  ;;  %s4844_s21 = int_to_ptr.vmem [resolvable:$true] %s657_s21 }
  0x24   : > { %s5644_s5 = scalar_select %p4840_p6, 1, 0 }
  0x25   : > { %s4846_s30 = scalar_lea.sflag [#allocation9], %s647_s22  ;;  %p4852_p8 = pneg %p4840_p6 }
  0x26   : > { %s4837_s27 = scalar_lea.hbm %s5643_s26, %s4828_s1  ;;  %s4447_s24 = scalar_lea.hbm %s5643_s26, 32 }
  0x27   : > { %s4442_s18 = scalar_lea.hbm %s4837_s27, 16  ;;  %p4448_p11 = scmp.lt.u32.totalorder %s4837_s27, %s5643_s26 }
  0x28   : > { %p4443_p7 = scmp.ne.s32.totalorder %s4837_s27, %s4442_s18  ;;  %p4449_p12 = scmp.lt.u32.totalorder %s4447_s24, %s4442_s18 }
  0x29   : > { %s5645_s2 = scalar_select %p4852_p8, 1, 0 }
  0x2a   : > { %p4445_p9 = pnand %p4852_p8, %p4443_p7  ;;  %p4450_p13 = por %p4449_p12, %p4448_p11 }
  0x2b   : > { %p4451_p0 = scmp.lt.u32.totalorder %s4442_s18, %s4837_s27 }
  0x2c   : > { %p4446_p10 = pneg %p4445_p9 }
  0x2d   : > { %p4452_p1 = por %p4451_p0, %p4450_p13 }
  0x2f   : > { %p4453_p2 = pnand %p4452_p1, %p4446_p10 }
  0x31   : > { %4456 = shalt.err (!%p4453_p2)
}
  0x32   : > { %s4457_s22 = scalar_lea.vmem %s4844_s21, 16  ;;  %s4650_s20 = smov [#allocation8]  }
  0x33   : > { %p4458_p3 = scmp.ne.s32.totalorder %s4844_s21, %s4457_s22  ;;  %s4462_s25 = sshll.u32 %s4650_s20, 4  ;;  %s4463_s25 = int_to_ptr.vmem [resolvable:$false] %s4462_s25 }
  0x34   : > { %s4464_s17 = scalar_lea.vmem %s4463_s25, 32  ;;  %p4465_p7 = scmp.lt.s32.totalorder %s4844_s21, %s4463_s25 }
  0x35   : > { %p4460_p4 = pnand %p4458_p3, %p4852_p8  ;;  %p4466_p9 = scmp.lt.s32.totalorder %s4464_s17, %s4457_s22 }
  0x37   : > { %p4461_p5 = pneg %p4460_p4  ;;  %p4467_p11 = por %p4466_p9, %p4465_p7 }
  0x39   : > { %p4468_p12 = pnand %p4467_p11, %p4461_p5 }
  0x3b   : > { %4471 = shalt.err (!%p4468_p12)
}
  0x3c   : > { %4150 = dma.hbm_to_vmem [thread:$0]  (!%p4840_p6), %s4837_s27, 16, %s4844_s21, %s4846_s30  }
  0x3d   : > { %s4877_s29 = sadd.s32 4294967295, %s4648_s4   ;;  %p143_p10 = scmp.ne.s32.totalorder %s4632_s28, %s4628_s3 }
  0x3e   : > { %p5613_p13 = scmp.eq.s32.totalorder %s4877_s29, 0  ;;  %p3690_p0 = scmp.ge.s32.totalorder %s4648_s4, 1 }
  0x3f   : > { %p592_p1 = scmp.lt.s32.totalorder %s4648_s4, 3  ;;  %s4651_s21 = smov [#allocation5]  }
  0x40   : > { %p4886_p2 = por %p5613_p13, %p143_p10  ;;  %s615_s27 = sshll.u32 %s4651_s21, 4  ;;  %s4894_s27 = int_to_ptr.vmem [resolvable:$true] %s615_s27 }
  0x41   : > { %p4890_p3 = pnand %p3690_p0, %p592_p1  ;;  %s5648_s20 = sld [smem:[#allocation27_spill]] }
  0x42   : > { %s5646_s18 = scalar_select %p4886_p2, 1, 0 }
  0x43   : > { %s5647_s24 = scalar_select %p4890_p3, 1, 0 }
  0x44   : > { %p4143_p4 = pneg %p4890_p3  ;;  %s667_s17 = scalar_lea.vmem [#allocation10], %s4825_s23 }
  0x45   : > { %s674_s26 = sshll.u32 %s667_s17, 4  ;;  %s675_s26 = int_to_ptr.vmem [resolvable:$true] %s674_s26 }
  0x46   : > { %p4907_p5 = pnand %p4143_p4, %p5613_p13 }
  0x47   : > { %s4902_s25 = scalar_lea.hbm %s5648_s20, %s4828_s1  ;;  %s4477_s19 = scalar_lea.hbm %s5648_s20, 32 }
  0x48   : > { %s5649_s4 = scalar_select %p4907_p5, 1, 0 }
  0x49   : > { %s4472_s21 = scalar_lea.hbm %s4902_s25, 16  ;;  %p4478_p12 = scmp.lt.u32.totalorder %s4902_s25, %s5648_s20 }
  0x4a   : > { %p4473_p7 = scmp.ne.s32.totalorder %s4902_s25, %s4472_s21  ;;  %p4479_p10 = scmp.lt.u32.totalorder %s4477_s19, %s4472_s21 }
  0x4b   : > { %p4481_p1 = scmp.lt.u32.totalorder %s4472_s21, %s4902_s25 }
  0x4c   : > { %p4475_p9 = pnand %p4473_p7, %p4852_p8  ;;  %p4480_p0 = por %p4479_p10, %p4478_p12 }
  0x4e   : > { %p4476_p11 = pneg %p4475_p9  ;;  %p4482_p4 = por %p4481_p1, %p4480_p0 }
  0x50   : > { %p4483_p13 = pnand %p4482_p4, %p4476_p11 }
  0x52   : > { %4486 = shalt.err (!%p4483_p13)
}
  0x53   : > { %s4487_s17 = scalar_lea.vmem %s675_s26, 16  ;;  %s4652_s13 = smov [#allocation10]  }
  0x54   : > { %p4488_p2 = scmp.ne.s32.totalorder %s675_s26, %s4487_s17  ;;  %s4492_s14 = sshll.u32 %s4652_s13, 4  ;;  %s4493_s14 = int_to_ptr.vmem [resolvable:$false] %s4492_s14 }
  0x55   : > { %s4494_s3 = scalar_lea.vmem %s4493_s14, 32  ;;  %p4495_p3 = scmp.lt.s32.totalorder %s675_s26, %s4493_s14 }
  0x56   : > { %p4490_p7 = pnand %p4488_p2, %p4852_p8  ;;  %p4496_p5 = scmp.lt.s32.totalorder %s4494_s3, %s4487_s17 }
  0x58   : > { %p4491_p9 = pneg %p4490_p7  ;;  %p4497_p6 = por %p4496_p5, %p4495_p3 }
  0x5a   : > { %p4498_p10 = pnand %p4497_p6, %p4491_p9 }
  0x5c   : > { %4501 = shalt.err (!%p4498_p10)
}
  0x5d   : > { %p5650_p12 = scmp.ne.s32.totalorder %s5644_s5, 0  ;;  %s5651_s19 = sld [smem:[#allocation24_spill]] }
  0x5e   : > { %p5652_p2 = scmp.ne.s32.totalorder %s5649_s4, 0 }
  0x5f   : > { %4153 = dma.hbm_to_vmem [thread:$0]  (!%p5650_p12), %s4902_s25, 16, %s675_s26, %s4846_s30  }
  0x60   : > { %p4504_p11 = pneg %p5652_p2 }
  0x63   : > { %s4502_s21 = scalar_lea.hbm %s5651_s19, 128 }
  0x64   : > { %p4503_p13 = scmp.ne.s32.totalorder %s5651_s19, %s4502_s21  ;;  %p4509_p6 = scmp.lt.u32.totalorder %s4502_s21, %s5651_s19 }
  0x66   : > { %p4505_p0 = pnand %p4504_p11, %p4503_p13 }
  0x68   : > { %p4506_p3 = pneg %p4505_p0 }
  0x6a   : > { %p4511_p5 = pnand %p4509_p6, %p4506_p3 }
  0x6c   : > { %4514 = shalt.err (!%p4511_p5)
}
  0x6d   : > { %s4515_s26 = scalar_lea.vmem %s4894_s27, 128  ;;  %p4523_p9 = scmp.lt.s32.totalorder %s4894_s27, %s4894_s27 }
  0x6e   : > { %p4516_p1 = scmp.ne.s32.totalorder %s4894_s27, %s4515_s26  ;;  %p4524_p10 = scmp.lt.s32.totalorder %s4515_s26, %s4515_s26 }
  0x70   : > { %p4518_p4 = pnand %p4516_p1, %p4504_p11  ;;  %p4525_p12 = por %p4524_p10, %p4523_p9 }
  0x72   : > { %p4519_p7 = pneg %p4518_p4 }
  0x74   : > { %p4526_p8 = pnand %p4525_p12, %p4519_p7 }
  0x76   : > { %4529 = shalt.err (!%p4526_p8)
}
  0x77   : > { %4146 = dma.hbm_to_vmem [thread:$0]  (!%p5652_p2), %s5651_s19, 128, %s4894_s27, [#allocation6]  }
  0x78   : > { %s5653_s6 = sld [smem:[#allocation29_spill]]  ;;  %s692_s15 = scalar_lea.vmem [#allocation11], %s4825_s23 }
  0x79   : > { %s699_s4 = sshll.u32 %s692_s15, 4  ;;  %s690_s16 = scalar_lea.sflag [#allocation12], %s4825_s23  ;;  %s700_s4 = int_to_ptr.vmem [resolvable:$true] %s699_s4 }
  0x7a   : > { %p5654_p12 = scmp.ne.s32.totalorder %s5645_s2, 0 }
  0x7e   : > { %s4954_s3 = scalar_lea.hbm %s5653_s6, %s4828_s1  ;;  %s4535_s13 = scalar_lea.hbm %s5653_s6, 32 }
  0x7f   : > { %s4530_s21 = scalar_lea.hbm %s4954_s3, 16  ;;  %p4536_p2 = scmp.lt.u32.totalorder %s4954_s3, %s5653_s6 }
  0x80   : > { %p4531_p8 = scmp.ne.s32.totalorder %s4954_s3, %s4530_s21  ;;  %p4537_p0 = scmp.lt.u32.totalorder %s4535_s13, %s4530_s21 }
  0x81   : > { %p4539_p6 = scmp.lt.u32.totalorder %s4530_s21, %s4954_s3 }
  0x82   : > { %p4533_p13 = pnand %p4531_p8, %p5654_p12  ;;  %p4538_p3 = por %p4537_p0, %p4536_p2 }
  0x84   : > { %p4534_p11 = pneg %p4533_p13  ;;  %p4540_p5 = por %p4539_p6, %p4538_p3 }
  0x86   : > { %p4541_p1 = pnand %p4540_p5, %p4534_p11 }
  0x88   : > { %4544 = shalt.err (!%p4541_p1)
}
  0x89   : > { %s4545_s23 = scalar_lea.vmem %s700_s4, 16  ;;  %s4653_s26 = smov [#allocation11]  }
  0x8a   : > { %p4546_p4 = scmp.ne.s32.totalorder %s700_s4, %s4545_s23  ;;  %s4550_s30 = sshll.u32 %s4653_s26, 4  ;;  %s4551_s30 = int_to_ptr.vmem [resolvable:$false] %s4550_s30 }
  0x8b   : > { %s4552_s20 = scalar_lea.vmem %s4551_s30, 32  ;;  %p4553_p10 = scmp.lt.s32.totalorder %s700_s4, %s4551_s30 }
  0x8c   : > { %p4548_p7 = pnand %p4546_p4, %p5654_p12  ;;  %p4554_p8 = scmp.lt.s32.totalorder %s4552_s20, %s4545_s23 }
  0x8e   : > { %p4549_p9 = pneg %p4548_p7  ;;  %p4555_p13 = por %p4554_p8, %p4553_p10 }
  0x90   : > { %p4556_p0 = pnand %p4555_p13, %p4549_p9 }
  0x92   : > { %4559 = shalt.err (!%p4556_p0)
}
  0x93   : > { %p5655_p2 = scmp.ne.s32.totalorder %s5644_s5, 0  ;;  %p5656_p11 = scmp.ne.s32.totalorder %s5647_s24, 0 }
  0x94   : > { %p5657_p3 = scmp.eq.s32.totalorder (!%p5656_p11), %s4877_s29, 0 }
  0x95   : > { %4156 = dma.hbm_to_vmem [thread:$0]  (!%p5655_p2), %s4954_s3, 16, %s700_s4, %s690_s16  }
  0x96   : > { %762 = sbr.rel (%p5656_p11) target bundleno = 3963 (0xf7b), region = 104 }
  0x9d   : > { %4611 = dma.done.wait (%p5657_p3), [#allocation6], 128   ;;  %p5658_p12 = pmov %p5657_p3 }
  0x9e   : > { %s768_s2 = sand.u32 1, %s4877_s29   ;;  %s4983_s25 = sand.u32 1, %s4632_s28  }
  0x9f   : > { %4613 = vsyncadd (%p5658_p12), [#allocation6], 4294967168  ;;  %s769_s17 = scalar_lea.sflag [#allocation9], %s768_s2  ;;  %p5659_p6 = scmp.ne.s32.totalorder %s5646_s18, 0 }
  0xa1   : > { %4615 = dma.done.wait (%p5659_p6), %s769_s17, 32  }
  0xa2   : > { %4617 = vsyncadd (%p5659_p6), %s769_s17, 4294967264  ;;  %s785_s3 = scalar_lea.sflag [#allocation12], %s4983_s25 }
  0xa3   : > { %4619 = dma.done.wait (%p5659_p6), %s785_s3, 16  }
  0xa4   : > { %4621 = vsyncadd (%p5659_p6), %s785_s3, 4294967280  ;;  %p896_p5 = scmp.lt.s32.totalorder %s4640_s0, 1  ;;  %s5660_s14 = sld [smem:[#allocation28_spill]] }
  0xa5   : > { %s5661_s7 = sld [smem:[#allocation30_spill]]  ;;  %s5662_s6 = sld [smem:[#allocation32_spill]] }
  0xa6   : > { %s4999_s4 = scalar_select %p896_p5, %s4640_s0, 1 }
  0xa7   : > { %s5663_s17 = sld [smem:[#allocation31_spill]]  ;;  %p3707_p1 = scmp.ne.s32.totalorder %s4640_s0, 0 }
  0xa8   : > { %s3800_s16 = sshll.u32 %s4999_s4, 4  ;;  %s914_s24 = scalar_lea.vmem %s5589_s10, %s4999_s4  ;;  %v4654_v4 = vmov (!%p3707_p1), 0   ;;  %v966_v5 = vld [vmem:[#allocation5] sm:$0xff] (!%p3707_p1)  ;;  %v940_v8 = vlaneseq (!%p3707_p1)  ;;  %vm967_vm0 = vcmask (!%p3707_p1), 64512   ;;  %v4655_v12 = vmov (!%p3707_p1), 0.0  }
  0xa9   : > { %s5027_s27 = scalar_lea.vmem %s5590_s11, %s3800_s16  ;;  %s3803_s23 = sshll.u32 %s4999_s4, 5  ;;  %4225 = vset.pattern.permute.xlu1 (!%p3707_p1), %v4654_v4  ;;  %4224 = vset.pattern.permute.xlu0 (!%p3707_p1), %v4654_v4  ;;  %vm1071_vm5 = vcmask (!%p3707_p1), 261120  }
  0xaa   : > { %s5009_s1 = scalar_lea.vmem %s5660_s14, %s3800_s16  ;;  %s922_s14 = scalar_lea.vmem %s5591_s12, %s4999_s4  ;;  %3891 = vmatprep.subr.mxu0 (!%p3707_p1), %v966_v5  ;;  %4127 = vmatprep.subr.mxu1 (!%p3707_p1), %v966_v5  ;;  %v941_v9 = vand.u32 (!%p3707_p1), 127, %v940_v8 }
  0xab   : > { %s5014_s30 = scalar_lea.vmem %s5661_s7, %s3800_s16  ;;  %s930_s7 = scalar_lea.vmem %s5662_s6, %s4999_s4  ;;  %3892 = vmatpush3.msra.mxu0 (!%p3707_p1), %v966_v5  ;;  %4128 = vmatpush3.msra.mxu1 (!%p3707_p1), %v966_v5 }
  0xac   : > { %935 = sbr.rel (%p3707_p1) target bundleno = 531 (0x213), region = 124  ;;  %s5664_s3 = sld [smem:[#allocation23_spill]] (!%p3707_p1) }
  0xad   : > { %s5041_s19 = scalar_lea.vmem %s5663_s17, %s3803_s23  ;;  %s5666_s20 = sld [smem:[#allocation25_spill]] (!%p3707_p1) }
  0xb2   : > { %s5665_s21 = smov (!%p3707_p1), %s5664_s3  ;;  %v937_v2 = vld [vmem:[%s5664_s3 + $0x8] sm:$0xff] (!%p3707_p1) }
  0xb3   : > { %v936_v3 = vld [vmem:[%s5665_s21] sm:$0xff]  ;;  %946 = vperm.xlu1 %4225, %v937_v2   ;;  %v939_v6 = vld [vmem:[%s5665_s21 + $0x18] sm:$0xff]  ;;  %v938_v7 = vld [vmem:[%s5665_s21 + $0x10] sm:$0xff] }
  0xb4   : > { %943 = vperm.xlu0 %4224, %v936_v3   ;;  %v1066_v19 = vld [vmem:[%s5666_s20 + $0x8] sm:$0xff]  ;;  %v1065_v20 = vld [vmem:[%s5666_s20] sm:$0xff] }
  0xb7   : > { %952 = vperm.xlu1 %4225, %v939_v6  }
  0xb8   : > { %949 = vperm.xlu0 %4224, %v938_v7  }
 0x132   : > { %v947_v10 = vpop.permute.xlu1 %946 }
 0x133   : > { %v944_v11 = vpop.permute.xlu0 %943  ;;  %vm955_vm1 = vcmp.eq.s32.totalorder %v947_v10, %v941_v9 }
 0x134   : > { %vm954_vm2 = vcmp.eq.s32.totalorder %v944_v11, %v941_v9  ;;  %v3709_v13 = vsel %vm955_vm1, 1.0, %v4655_v12 }
 0x135   : > { %v3708_v14 = vsel %vm954_vm2, 1.0, %v4655_v12 }
 0x136   : > { %3893 = vmatprep.mubr.msk.f32.mxu0 %vm967_vm0, %v3708_v14  ;;  %v953_v15 = vpop.permute.xlu1 %952 }
 0x137   : > { %3894 = vmatmul.mubr.msk.f32.vlgmr.msra.gmra.mrb[0].mxu0 %vm967_vm0, %v3709_v13  ;;  %v950_v16 = vpop.permute.xlu0 %949  ;;  %vm957_vm3 = vcmp.eq.s32.totalorder %v953_v15, %v941_v9 }
 0x138   : > { %vm956_vm4 = vcmp.eq.s32.totalorder %v950_v16, %v941_v9  ;;  %v3711_v17 = vsel %vm957_vm3, 1.0, %v4655_v12 }
 0x139   : > { %v3710_v18 = vsel %vm956_vm4, 1.0, %v4655_v12 }
 0x13a   : > { %3896 = vmatprep.mubr.msk.f32.mxu1 %vm967_vm0, %v3710_v18 }
 0x13b   : > { %3897 = vmatmul.mubr.msk.f32.vlgmr.msra.gmra.mrb[0].mxu1 %vm967_vm0, %v3711_v17 }
 0x20a   : > { %v3895_v21 = vpop.f32.mrb[0].mxu0 }
 0x20b   : > { %v1068_v22 = vadd.f32 %v3895_v21, %v1066_v19  ;;  %v1046_v23 = vpop.f32.mrb[1].mxu0 }
 0x20c   : > { %v1067_v24 = vadd.f32 %v1065_v20, %v1046_v23 }
 0x20d   : > { %1073 = vst.msk [vmem:[#allocation2 + $0x8] sm:$0xff] %vm1071_vm5, %v1068_v22 }
 0x20e   : > { %1072 = vst.msk [vmem:[#allocation2] sm:$0xff] %vm1071_vm5, %v1067_v24  ;;  %v3898_v25 = vpop.f32.mrb[0].mxu1 }
 0x20f   : > { %v1070_v26 = vadd.f32 %v3898_v25, %v1066_v19  ;;  %v1056_v27 = vpop.f32.mrb[1].mxu1 }
 0x210   : > { %v1069_v28 = vadd.f32 %v1065_v20, %v1056_v27 }
 0x211   : > { %1075 = vst.msk [vmem:[#allocation2 + $0x18] sm:$0xff] %vm1071_vm5, %v1070_v26 }
 0x212   : > { %1074 = vst.msk [vmem:[#allocation2 + $0x10] sm:$0xff] %vm1071_vm5, %v1069_v28 }
 0x213 PF: > { %vm1082_vm6 = vcmask 261120   ;;  %v4336_v57 = vld [vmem:[%s5009_s1] sm:$0xff]   ;;  %v4337_v58 = vld [vmem:[%s5009_s1 + $0x8] sm:$0xff]   ;;  %s5667_s1 = scalar_lea.vmem [#allocation8], %s4983_s25  ;;  %s5668_s16 = scalar_lea.vmem [#allocation10], %s4983_s25  ;;  %vm1268_vm7 = vcmask 64512  }
 0x214   : > { %v1077_v31 = vld [vmem:[#allocation2 + $0x8] sm:$0xff]  ;;  %3899 = vmatprep.subr.bf16.mxu1 %v4336_v57  ;;  %v3716_v9 = vld [vmem:[%s5667_s1] ss:$0 sm:$0xff]  ;;  %s5669_s3 = scalar_lea.vmem [#allocation11], %s4983_s25  ;;  %s4656_s22 = smov 120   ;;  %vm5126_vm8 = vmpackc.low %vm1268_vm7, %vm1268_vm7  ;;  %vm1977_vm9 = vcmask 130048  }
 0x215   : > { %v1076_v29 = vld [vmem:[#allocation2] sm:$0xff]  ;;  %v1086_v35 = vsel %vm1082_vm6, %v1077_v31, 0.0  ;;  %3900 = vmatpush3.bf16.msra.mxu1 %v4336_v57  ;;  %s4657_s13 = smov 112   ;;  %s4658_s25 = smov 104   ;;  %vm2906_vm10 = vcmask 195584   ;;  %vm3194_vm11 = vcmask 523264  }
 0x216   : > { %v1083_v32 = vsel %vm1082_vm6, %v1076_v29, 0.0  ;;  %3901 = vmatprep.subr.bf16.mxu1 %v4337_v58  ;;  %v3717_v15 = vld [vmem:[%s5668_s16] ss:$0 sm:$0xff]  ;;  %s4659_s6 = smov 96   ;;  %s4660_s5 = smov 64  }
 0x217   : > { %1084 = vadd.xlane.f32.xlu0 %v1083_v32  ;;  %v3718_v27 = vld [vmem:[%s5669_s3] ss:$0 sm:$0xff]  ;;  %s4661_s17 = smov 8   ;;  %s4662_s18 = smov 16  }
 0x218   : > { %v1079_v34 = vld [vmem:[#allocation2 + $0x18] sm:$0xff]  ;;  %s4663_s23 = smov 24   ;;  %s5672_s2 = scalar_lea.vmem %s5587_s8, %s4999_s4 }
 0x219   : > { %v1078_v30 = vld [vmem:[#allocation2 + $0x10] sm:$0xff]  ;;  %v1092_v36 = vsel %vm1082_vm6, %v1079_v34, 0.0  ;;  %3902 = vmatpush3.bf16.msra.mxu1 %v4337_v58  ;;  %s5673_s1 = scalar_lea.vmem %s5588_s9, %s4999_s4  ;;  %p3790_p4 = scmp.ne.s32.totalorder %s4640_s0, 1 }
 0x21a   : > { %v1089_v33 = vsel %vm1082_vm6, %v1078_v30, 0.0  ;;  %s5675_s4 = sld [smem:[#allocation33_spill]] (!%p3790_p4)  ;;  %s5678_s15 = sld [smem:[#allocation35_spill]] (!%p3790_p4)  ;;  %vm3406_vm12 = vcmask (!%p3790_p4), 130112   ;;  %vm3417_vm13 = vcmask (!%p3790_p4), 1041409   ;;  %vm3420_vm14 = vcmask (!%p3790_p4), 123904  }
 0x21b   : > { %1090 = vadd.xlane.f32.xlu1 %v1089_v33  ;;  %1087 = vadd.xlane.f32.xlu0 %v1086_v35  ;;  %vm3462_vm15 = vcmask (!%p3790_p4), 138240  }
 0x21f   : > { %1093 = vadd.xlane.f32.xlu1 %v1092_v36 }
 0x2a4   : > { %v1085_v37 = vpop.xlane.xlu0 %1084 }
 0x2a5   : > { %v1096_v39 = vmul.f32 0.03125, %v1085_v37 }
 0x2a7   : > { %v1100_v41 = vsub.f32 %v1076_v29, %v1096_v39 }
 0x2a8   : > { %v1091_v38 = vpop.xlane.xlu1 %1090  ;;  %v1088_v43 = vpop.xlane.xlu0 %1087 }
 0x2a9   : > { %v1098_v40 = vmul.f32 0.03125, %v1091_v38  ;;  %v1097_v45 = vmul.f32 0.03125, %v1088_v43  ;;  %v1104_v47 = vmul.f32 %v1100_v41, %v1100_v41 }
 0x2ab   : > { %v1102_v42 = vsub.f32 %v1078_v30, %v1098_v40  ;;  %v1101_v49 = vsub.f32 %v1077_v31, %v1097_v45  ;;  %v1108_v51 = vsel %vm1082_vm6, %v1104_v47, 0.0 }
 0x2ac   : > { %v1094_v44 = vpop.xlane.xlu1 %1093  ;;  %1109 = vadd.xlane.f32.xlu0 %v1108_v51 }
 0x2ad   : > { %v1099_v46 = vmul.f32 0.03125, %v1094_v44  ;;  %v1106_v48 = vmul.f32 %v1102_v42, %v1102_v42  ;;  %v1105_v53 = vmul.f32 %v1101_v49, %v1101_v49 }
 0x2af   : > { %v1103_v50 = vsub.f32 %v1079_v34, %v1099_v46  ;;  %v1114_v52 = vsel %vm1082_vm6, %v1106_v48, 0.0  ;;  %v1111_v55 = vsel %vm1082_vm6, %v1105_v53, 0.0 }
 0x2b0   : > { %1115 = vadd.xlane.f32.xlu0 %v1114_v52  ;;  %1112 = vadd.xlane.f32.xlu1 %v1111_v55 }
 0x2b1   : > { %v1107_v54 = vmul.f32 %v1103_v50, %v1103_v50 }
 0x2b3   : > { %v1117_v56 = vsel %vm1082_vm6, %v1107_v54, 0.0 }
 0x2b4   : > { %1118 = vadd.xlane.f32.xlu1 %v1117_v56 }
 0x339   : > { %v1110_v59 = vpop.xlane.xlu0 %1109 }
 0x33a   : > { %v1120_v60 = vmul.f32 0.03125, %v1110_v59 }
 0x33c   : > { %v1124_v61 = vadd.f32 1e-05, %v1120_v60 }
 0x33d   : > { %v1113_v62 = vpop.xlane.xlu1 %1112  ;;  %v1116_v63 = vpop.xlane.xlu0 %1115 }
 0x33e   : > { %4346 = vrsqrt.f32 %v1124_v61  ;;  %v1121_v0 = vmul.f32 0.03125, %v1113_v62  ;;  %v1122_v1 = vmul.f32 0.03125, %v1116_v63 }
 0x340   : > { %v1125_v2 = vadd.f32 1e-05, %v1121_v0  ;;  %v1126_v3 = vadd.f32 1e-05, %v1122_v1 }
 0x341   : > { %v1119_v4 = vpop.xlane.xlu1 %1118 }
 0x342   : > { %4348 = vrsqrt.f32 %v1125_v2  ;;  %v1123_v5 = vmul.f32 0.03125, %v1119_v4 }
 0x343   : > { %4350 = vrsqrt.f32 %v1126_v3 }
 0x344   : > { %v1127_v6 = vadd.f32 1e-05, %v1123_v5 }
 0x346   : > { %4352 = vrsqrt.f32 %v1127_v6 }
 0x348   : > { %v4347_v7 = vpop.eup %4346 }
 0x349   : > { %v1132_v8 = vmul.f32 %v4347_v7, %v1100_v41 }
 0x34b   : > { %v1142_v13 = vmul.f32 %v3716_v9, %v1132_v8 }
 0x34c   : > { %v4349_v10 = vpop.eup %4348 }
 0x34d   : > { %v4351_v11 = vpop.eup %4350  ;;  %v1133_v12 = vmul.f32 %v4349_v10, %v1101_v49  ;;  %v1152_v19 = vadd.f32 %v3717_v15, %v1142_v13 }
 0x34e   : > { %v1134_v14 = vmul.f32 %v4351_v11, %v1102_v42 }
 0x34f   : > { %v1143_v16 = vmul.f32 %v3716_v9, %v1133_v12 }
 0x350   : > { %v4353_v17 = vpop.eup %4352  ;;  %v1144_v21 = vmul.f32 %v3716_v9, %v1134_v14 }
 0x351   : > { %v1135_v18 = vmul.f32 %v4353_v17, %v1103_v50  ;;  %v1153_v20 = vadd.f32 %v3717_v15, %v1143_v16 }
 0x352   : > { %v1154_v24 = vadd.f32 %v3717_v15, %v1144_v21 }
 0x353   : > { %v1156_v22 = vpack.c.bf16 %v1153_v20, %v1152_v19  ;;  %v1145_v23 = vmul.f32 %v3716_v9, %v1135_v18 }
 0x355   : > { %3903 = vmatprep.mubr.msk.bf16.mxu1 %vm1082_vm6, %v1156_v22  ;;  %v1155_v25 = vadd.f32 %v3717_v15, %v1145_v23 }
 0x357   : > { %v1157_v26 = vpack.c.bf16 %v1155_v25, %v1154_v24 }
 0x359   : > { %3904 = vmatmul.mubr.msk.bf16.vlgmr.msra.gmra.mrb[0].mxu1 %vm1082_vm6, %v1157_v26 }
 0x42c   : > { %v3905_v28 = vpop.f32.mrb[0].mxu1 }
 0x42d   : > { %v1230_v29 = vadd.f32 %v3905_v28, %v3718_v27  ;;  %v1221_v30 = vpop.f32.mrb[1].mxu1 }
 0x42e   : > { %v1222_v31 = vadd.f32 %v3718_v27, %v1221_v30  ;;  %v3906_v32 = vpop.f32.mrb[2].mxu1 }
 0x42f   : > { %1244 = vrot.lane.b32.xlu1 %v1230_v29, %s4656_s22  ;;  %v1224_v33 = vpop.f32.mrb[3].mxu1  ;;  %3918 = vmatprep.mubr.msk.f32.mxu0 %vm1268_vm7, %v1230_v29  ;;  %v1233_v35 = vadd.f32 %v3906_v32, %v3718_v27 }
 0x430   : > { %v1225_v34 = vadd.f32 %v3718_v27, %v1224_v33  ;;  %1240 = vrot.lane.b32.xlu0 %v1222_v31, %s4656_s22  ;;  %3911 = vmatprep.mubr.msk.f32.mxu1 %vm1268_vm7, %v1222_v31 }
 0x431   : > { %v4231_v37 = vpack.i.bf16 %v1233_v35, %v1230_v29 }
 0x432   : > { %v4226_v36 = vpack.i.bf16 %v1225_v34, %v1222_v31 }
 0x433   : > { %1242 = vrot.lane.b32.xlu1 %v1225_v34, %s4656_s22 }
 0x434   : > { %1248 = vrot.lane.b32.xlu0 %v1222_v31, %s4657_s13 }
 0x437   : > { %1246 = vrot.lane.b32.xlu1 %v1233_v35, %s4656_s22 }
 0x438   : > { %1252 = vrot.lane.b32.xlu0 %v1230_v29, %s4657_s13 }
 0x43b   : > { %1250 = vrot.lane.b32.xlu1 %v1225_v34, %s4657_s13 }
 0x43c   : > { %1256 = vrot.lane.b32.xlu0 %v1222_v31, %s4658_s25 }
 0x43f   : > { %1254 = vrot.lane.b32.xlu1 %v1233_v35, %s4657_s13 }
 0x440   : > { %1260 = vrot.lane.b32.xlu0 %v1230_v29, %s4658_s25 }
 0x443   : > { %1258 = vrot.lane.b32.xlu1 %v1225_v34, %s4658_s25 }
 0x444   : > { %4227 = vrot.lane.b32.xlu0 %v4226_v36, %s4659_s6 }
 0x447   : > { %1262 = vrot.lane.b32.xlu1 %v1233_v35, %s4658_s25 }
 0x44b   : > { %4232 = vrot.lane.b32.xlu1 %v4231_v37, %s4659_s6 }
 0x4a1   : > { %v1245_v38 = vpop.permute.xlu1 %1244 }
 0x4a2   : > { %v1241_v39 = vpop.permute.xlu0 %1240 }
 0x4a5   : > { %v5084_v40 = vpop.permute.xlu1 %1242 }
 0x4a6   : > { %v4236_v41 = vpack.i.bf16 %v5084_v40, %v1241_v39  ;;  %v5087_v42 = vpop.permute.xlu0 %1248 }
 0x4a8   : > { %4237 = vrot.lane.b32.xlu0 %v4236_v41, %s4659_s6 }
 0x4a9   : > { %v5090_v43 = vpop.permute.xlu1 %1246 }
 0x4aa   : > { %v4241_v44 = vpack.i.bf16 %v5090_v43, %v1245_v38  ;;  %v5093_v45 = vpop.permute.xlu0 %1252 }
 0x4ac   : > { %4242 = vrot.lane.b32.xlu1 %v4241_v44, %s4659_s6 }
 0x4ad   : > { %v5096_v46 = vpop.permute.xlu1 %1250 }
 0x4ae   : > { %v5100_v47 = vpack.i.bf16 %v5096_v46, %v5087_v42  ;;  %v5102_v48 = vpop.permute.xlu0 %1256 }
 0x4b0   : > { %4247 = vrot.lane.b32.xlu0 %v5100_v47, %s4659_s6 }
 0x4b1   : > { %v5106_v49 = vpop.permute.xlu1 %1254 }
 0x4b2   : > { %v5110_v50 = vpack.i.bf16 %v5106_v49, %v5093_v45  ;;  %v5112_v51 = vpop.permute.xlu0 %1260 }
 0x4b4   : > { %4252 = vrot.lane.b32.xlu1 %v5110_v50, %s4659_s6 }
 0x4b5   : > { %v5116_v52 = vpop.permute.xlu1 %1258 }
 0x4b6   : > { %v5120_v53 = vpack.i.bf16 %v5116_v52, %v5102_v48  ;;  %v4228_v54 = vpop.permute.xlu0 %4227 }
 0x4b7   : > { %v4230_v55 = vunpack.i.h.bf16 %v4228_v54  ;;  %v4229_v56 = vunpack.i.l.bf16 %v4228_v54 }
 0x4b8   : > { %4257 = vrot.lane.b32.xlu0 %v5120_v53, %s4659_s6 }
 0x4b9   : > { %v4047_v58 = vpack.c.bf16 %v4230_v55, %v4229_v56  ;;  %v5130_v59 = vpop.permute.xlu1 %1262 }
 0x4ba   : > { %v5134_v60 = vpack.i.bf16 %v5130_v59, %v5112_v51 }
 0x4bb   : > { %4049 = vmatprep.subr.msk.bf16.mxu1 %vm5126_vm8, %v4047_v58 }
 0x4bc   : > { %4267 = vrot.lane.b32.xlu0 %v4226_v36, %s4660_s5  ;;  %4262 = vrot.lane.b32.xlu1 %v5134_v60, %s4659_s6 }
 0x4bd   : > { %4052 = vmatpush3.bf16.xpose.msk.msra.mxu1 %vm5126_vm8, %v4047_v58  ;;  %v4233_v61 = vpop.permute.xlu1 %4232 }
 0x4be   : > { %v4235_v62 = vunpack.i.h.bf16 %v4233_v61  ;;  %v4234_v63 = vunpack.i.l.bf16 %v4233_v61 }
 0x4c0   : > { %4272 = vrot.lane.b32.xlu1 %v4231_v37, %s4660_s5  ;;  %v4053_v0 = vpack.c.bf16 %v4235_v62, %v4234_v63 }
 0x4c2   : > { %4055 = vmatprep.subr.msk.bf16.mxu0 %vm5126_vm8, %v4053_v0 }
 0x4c3   : > { %4058 = vmatpush3.bf16.xpose.msk.msra.mxu0 %vm5126_vm8, %v4053_v0 }
 0x4c4   : > { %3912 = vmatmul.mubr.msk.f32.vlgmr.msra.gmra.mrb[4].mxu1 %vm1268_vm7, %v1225_v34  ;;  %4277 = vrot.lane.b32.xlu1 %v4241_v44, %s4660_s5 }
 0x4c5   : > { %3925 = vmatprep.mubr.msk.f32.mxu1 %vm1268_vm7, %v1241_v39 }
 0x4c8   : > { %4282 = vrot.lane.b32.xlu1 %v4236_v41, %s4660_s5 }
 0x4ca   : > { %3919 = vmatmul.mubr.msk.f32.vlgmr.msra.gmra.mrb[0].mxu0 %vm1268_vm7, %v1233_v35 }
 0x4cb   : > { %3932 = vmatprep.mubr.msk.f32.mxu0 %vm1268_vm7, %v1245_v38 }
 0x51a   : > { %v4238_v1 = vpop.permute.xlu0 %4237 }
 0x51b   : > { %v4240_v2 = vunpack.i.h.bf16 %v4238_v1  ;;  %v4239_v3 = vunpack.i.l.bf16 %v4238_v1 }
 0x51d   : > { %v4059_v4 = vpack.c.bf16 %v4240_v2, %v4239_v3 }
 0x51e   : > { %v4243_v5 = vpop.permute.xlu1 %4242 }
 0x51f   : > { %v4245_v6 = vunpack.i.h.bf16 %v4243_v5  ;;  %v4244_v7 = vunpack.i.l.bf16 %v4243_v5  ;;  %4061 = vmatprep.subr.msk.bf16.mxu1 %vm5126_vm8, %v4059_v4 }
 0x520   : > { %4064 = vmatpush3.bf16.xpose.msk.msra.mxu1 %vm5126_vm8, %v4059_v4 }
 0x521   : > { %v4065_v8 = vpack.c.bf16 %v4245_v6, %v4244_v7 }
 0x522   : > { %v4248_v9 = vpop.permute.xlu0 %4247 }
 0x523   : > { %v4250_v10 = vunpack.i.h.bf16 %v4248_v9  ;;  %v4249_v11 = vunpack.i.l.bf16 %v4248_v9  ;;  %4067 = vmatprep.subr.msk.bf16.mxu0 %vm5126_vm8, %v4065_v8 }
 0x524   : > { %4070 = vmatpush3.bf16.xpose.msk.msra.mxu0 %vm5126_vm8, %v4065_v8 }
 0x525   : > { %v4071_v12 = vpack.c.bf16 %v4250_v10, %v4249_v11 }
 0x526   : > { %v4253_v13 = vpop.permute.xlu1 %4252 }
 0x527   : > { %v4255_v14 = vunpack.i.h.bf16 %v4253_v13  ;;  %v4254_v15 = vunpack.i.l.bf16 %v4253_v13  ;;  %3926 = vmatmul.mubr.msk.f32.vlgmr.msra.gmra.mrb[6].mxu1 %vm1268_vm7, %v5084_v40  ;;  %4073 = vmatprep.subr.msk.bf16.mxu1 %vm5126_vm8, %v4071_v12 }
 0x528   : > { %4076 = vmatpush3.bf16.xpose.msk.msra.mxu1 %vm5126_vm8, %v4071_v12  ;;  %3939 = vmatprep.mubr.msk.f32.mxu1 %vm1268_vm7, %v5087_v42 }
 0x529   : > { %v4077_v16 = vpack.c.bf16 %v4255_v14, %v4254_v15 }
 0x52a   : > { %v4258_v17 = vpop.permute.xlu0 %4257 }
 0x52b   : > { %v4260_v18 = vunpack.i.h.bf16 %v4258_v17  ;;  %v4259_v19 = vunpack.i.l.bf16 %v4258_v17  ;;  %3933 = vmatmul.mubr.msk.f32.vlgmr.msra.gmra.mrb[2].mxu0 %vm1268_vm7, %v5090_v43  ;;  %4079 = vmatprep.subr.msk.bf16.mxu0 %vm5126_vm8, %v4077_v16 }
 0x52c   : > { %4082 = vmatpush3.bf16.xpose.msk.msra.mxu0 %vm5126_vm8, %v4077_v16  ;;  %3946 = vmatprep.mubr.msk.f32.mxu0 %vm1268_vm7, %v5093_v45 }
 0x52d   : > { %v4083_v20 = vpack.c.bf16 %v4260_v18, %v4259_v19 }
 0x52e   : > { %v4263_v21 = vpop.permute.xlu1 %4262  ;;  %v4268_v22 = vpop.permute.xlu0 %4267 }
 0x52f   : > { %v4265_v23 = vunpack.i.h.bf16 %v4263_v21  ;;  %v4264_v24 = vunpack.i.l.bf16 %v4263_v21  ;;  %v4270_v25 = vunpack.i.h.bf16 %v4268_v22  ;;  %v4269_v26 = vunpack.i.l.bf16 %v4268_v22  ;;  %3940 = vmatmul.mubr.msk.f32.vlgmr.msra.gmra.mrb[8].mxu1 %vm1268_vm7, %v5096_v46  ;;  %4085 = vmatprep.subr.msk.bf16.mxu1 %vm5126_vm8, %v4083_v20 }
 0x530   : > { %4088 = vmatpush3.bf16.xpose.msk.msra.mxu1 %vm5126_vm8, %v4083_v20  ;;  %3953 = vmatprep.mubr.msk.f32.mxu1 %vm1268_vm7, %v5102_v48 }
 0x531   : > { %v4089_v27 = vpack.c.bf16 %v4265_v23, %v4264_v24  ;;  %v4095_v28 = vpack.c.bf16 %v4270_v25, %v4269_v26 }
 0x532   : > { %v4273_v29 = vpop.permute.xlu1 %4272 }
 0x533   : > { %v4275_v30 = vunpack.i.h.bf16 %v4273_v29  ;;  %v4274_v31 = vunpack.i.l.bf16 %v4273_v29  ;;  %3947 = vmatmul.mubr.msk.f32.vlgmr.msra.gmra.mrb[4].mxu0 %vm1268_vm7, %v5106_v49  ;;  %4091 = vmatprep.subr.msk.bf16.mxu0 %vm5126_vm8, %v4089_v27 }
 0x534   : > { %4096 = vmatprep.subr.bf16.mxu1 %v4095_v28  ;;  %4094 = vmatpush3.bf16.xpose.msk.msra.mxu0 %vm5126_vm8, %v4089_v27 }
 0x535   : > { %3960 = vmatprep.mubr.msk.f32.mxu0 %vm1268_vm7, %v5112_v51  ;;  %v5196_v33 = vpack.c.bf16 %v4275_v30, %v4274_v31 }
 0x536   : > { %v5194_v32 = vpop.permute.xlu1 %4277 }
 0x537   : > { %3954 = vmatmul.mubr.msk.f32.vlgmr.msra.gmra.mrb[10].mxu1 %vm1268_vm7, %v5116_v52 }
 0x538   : > { %4098 = vmatpush3.bf16.msra.mxu1 %v4095_v28 }
 0x539   : > { %4100 = vmatprep.subr.bf16.mxu1 %v5196_v33 }
 0x53a   : > { %v4283_v34 = vpop.permute.xlu1 %4282 }
 0x53b   : > { %v4285_v35 = vunpack.i.h.bf16 %v4283_v34  ;;  %v4284_v36 = vunpack.i.l.bf16 %v4283_v34  ;;  %3961 = vmatmul.mubr.msk.f32.vlgmr.msra.gmra.mrb[6].mxu0 %vm1268_vm7, %v5130_v59 }
 0x53d   : > { %v4103_v37 = vpack.c.bf16 %v4285_v35, %v4284_v36 }
 0x53f   : > { %4104 = vmatprep.subr.bf16.mxu0 %v4103_v37 }
 0x540   : > { %4106 = vmatpush3.bf16.msra.mxu0 %v4103_v37 }
 0x597   : > { %v3913_v38 = vpop.f32.mrb[4].mxu1 }
 0x598   : > { %v5203_v39 = vmul.f32 0.35355338, %v3913_v38  ;;  %v1343_v40 = vpop.f32.mrb[5].mxu1 }
 0x599   : > { %v5213_v48 = vmul.f32 0.35355338, %v1343_v40 }
 0x59a   : > { %v1981_v41 = vsel %vm1977_vm9, %v5203_v39, -inf }
 0x59b   : > { %1982 = vmax.xlane.f32.xlu1 %v1981_v41  ;;  %v1978_v51 = vsel %vm1977_vm9, %v5213_v48, -inf }
 0x59d   : > { %v3920_v42 = vpop.f32.mrb[0].mxu0 }
 0x59e   : > { %v5207_v43 = vmul.f32 0.35355338, %v3920_v42  ;;  %v1430_v44 = vpop.f32.mrb[1].mxu0 }
 0x59f   : > { %v5209_v45 = vmul.f32 0.35355338, %v1430_v44 }
 0x5a0   : > { %v1987_v46 = vsel %vm1977_vm9, %v5207_v43, -inf }
 0x5a1   : > { %1988 = vmax.xlane.f32.xlu0 %v1987_v46  ;;  %v1984_v49 = vsel %vm1977_vm9, %v5209_v45, -inf }
 0x5a5   : > { %1985 = vmax.xlane.f32.xlu0 %v1984_v49 }
 0x5a9   : > { %1979 = vmax.xlane.f32.xlu0 %v1978_v51 }
 0x5fa   : > { %v3927_v52 = vpop.f32.mrb[6].mxu1 }
 0x5fb   : > { %v1517_v54 = vpop.f32.mrb[7].mxu1  ;;  %v5223_v59 = vmul.f32 0.35355338, %v3927_v52 }
 0x5fc   : > { %v5227_v62 = vmul.f32 0.35355338, %v1517_v54 }
 0x5fd   : > { %v1993_v2 = vsel %vm1977_vm9, %v5223_v59, -inf }
 0x5fe   : > { %v3934_v55 = vpop.f32.mrb[2].mxu0  ;;  %v1990_v4 = vsel %vm1977_vm9, %v5227_v62, -inf }
 0x5ff   : > { %v5219_v56 = vmul.f32 0.35355338, %v3934_v55  ;;  %v1604_v57 = vpop.f32.mrb[3].mxu0 }
 0x600   : > { %v5221_v58 = vmul.f32 0.35355338, %v1604_v57 }
 0x601   : > { %v1999_v61 = vsel %vm1977_vm9, %v5219_v56, -inf }
 0x602   : > { %2000 = vmax.xlane.f32.xlu1 %v1999_v61  ;;  %v3941_v63 = vpop.f32.mrb[8].mxu1  ;;  %v1996_v0 = vsel %vm1977_vm9, %v5221_v58, -inf }
 0x603   : > { %1997 = vmax.xlane.f32.xlu0 %v1996_v0  ;;  %v1691_v1 = vpop.f32.mrb[9].mxu1  ;;  %v5239_v8 = vmul.f32 0.35355338, %v3941_v63 }
 0x604   : > { %v5243_v10 = vmul.f32 0.35355338, %v1691_v1 }
 0x605   : > { %v2005_v14 = vsel %vm1977_vm9, %v5239_v8, -inf }
 0x606   : > { %v3948_v3 = vpop.f32.mrb[4].mxu0  ;;  %1994 = vmax.xlane.f32.xlu1 %v1993_v2  ;;  %v2002_v16 = vsel %vm1977_vm9, %v5243_v10, -inf }
 0x607   : > { %v5235_v5 = vmul.f32 0.35355338, %v3948_v3  ;;  %v1778_v6 = vpop.f32.mrb[5].mxu0  ;;  %1991 = vmax.xlane.f32.xlu0 %v1990_v4 }
 0x608   : > { %v5237_v7 = vmul.f32 0.35355338, %v1778_v6 }
 0x609   : > { %v2011_v9 = vsel %vm1977_vm9, %v5235_v5, -inf }
 0x60a   : > { %2012 = vmax.xlane.f32.xlu1 %v2011_v9  ;;  %v3955_v11 = vpop.f32.mrb[10].mxu1  ;;  %v2008_v12 = vsel %vm1977_vm9, %v5237_v7, -inf }
 0x60b   : > { %2009 = vmax.xlane.f32.xlu0 %v2008_v12  ;;  %v1865_v13 = vpop.f32.mrb[11].mxu1  ;;  %v5255_v20 = vmul.f32 0.35355338, %v3955_v11 }
 0x60c   : > { %v5259_v22 = vmul.f32 0.35355338, %v1865_v13 }
 0x60d   : > { %v2017_v24 = vsel %vm1977_vm9, %v5255_v20, -inf }
 0x60e   : > { %v3962_v15 = vpop.f32.mrb[6].mxu0  ;;  %2006 = vmax.xlane.f32.xlu1 %v2005_v14  ;;  %v2014_v25 = vsel %vm1977_vm9, %v5259_v22, -inf }
 0x60f   : > { %v5251_v17 = vmul.f32 0.35355338, %v3962_v15  ;;  %v1952_v18 = vpop.f32.mrb[7].mxu0  ;;  %2003 = vmax.xlane.f32.xlu0 %v2002_v16 }
 0x610   : > { %v5253_v19 = vmul.f32 0.35355338, %v1952_v18 }
 0x611   : > { %v2023_v21 = vsel %vm1977_vm9, %v5251_v17, -inf }
 0x612   : > { %2024 = vmax.xlane.f32.xlu1 %v2023_v21  ;;  %v2020_v23 = vsel %vm1977_vm9, %v5253_v19, -inf }
 0x613   : > { %2021 = vmax.xlane.f32.xlu0 %v2020_v23 }
 0x616   : > { %2018 = vmax.xlane.f32.xlu1 %v2017_v24 }
 0x617   : > { %2015 = vmax.xlane.f32.xlu0 %v2014_v25 }
 0x627   : > { %4292 = vrot.lane.b32.xlu1 %v5110_v50, %s4660_s5 }
 0x628   : > { %v1983_v29 = vpop.xlane.xlu1 %1982 }
 0x629   : > { %v2027_v34 = vsub.f32 %v5203_v39, %v1983_v29 }
 0x62b   : > { %v2044_v38 = vmul.f32 1.442695, %v2027_v34 }
 0x62d   : > { %4287 = vrot.lane.b32.xlu0 %v5100_v47, %s4660_s5 }
 0x62e   : > { %v1989_v26 = vpop.xlane.xlu0 %1988 }
 0x62f   : > { %v2029_v28 = vsub.f32 %v5207_v43, %v1989_v26 }
 0x631   : > { %v2048_v35 = vmul.f32 1.442695, %v2029_v28 }
 0x632   : > { %v1986_v27 = vpop.xlane.xlu0 %1985 }
 0x633   : > { %v2028_v30 = vsub.f32 %v5209_v45, %v1986_v27  ;;  %4354 = vpow2.f32 %v2048_v35 }
 0x635   : > { %v2046_v36 = vmul.f32 1.442695, %v2028_v30 }
 0x636   : > { %v1980_v31 = vpop.xlane.xlu0 %1979 }
 0x637   : > { %v2026_v37 = vsub.f32 %v5213_v48, %v1980_v31  ;;  %4356 = vpow2.f32 %v2046_v36 }
 0x638   : > { %4358 = vpow2.f32 %v2044_v38 }
 0x639   : > { %v2042_v50 = vmul.f32 1.442695, %v2026_v37 }
 0x63b   : > { %4360 = vpow2.f32 %v2042_v50 }
 0x63d   : > { %v5275_v47 = vpop.eup %4354 }
 0x63e   : > { %v2083_v41 = vsel %vm1977_vm9, %v5275_v47, 0.0 }
 0x641   : > { %v5277_v40 = vpop.eup %4356 }
 0x642   : > { %v5281_v42 = vpop.eup %4358  ;;  %v2080_v39 = vsel %vm1977_vm9, %v5277_v40, 0.0 }
 0x643   : > { %v2077_v44 = vsel %vm1977_vm9, %v5281_v42, 0.0 }
 0x645   : > { %v5285_v43 = vpop.eup %4360 }
 0x646   : > { %v2074_v45 = vsel %vm1977_vm9, %v5285_v43, 0.0 }
 0x64b   : > { %2084 = vadd.xlane.f32.xlu1 %v2083_v41 }
 0x64c   : > { %2081 = vadd.xlane.f32.xlu0 %v2080_v39 }
 0x64f   : > { %2078 = vadd.xlane.f32.xlu1 %v2077_v44 }
 0x650   : > { %2075 = vadd.xlane.f32.xlu0 %v2074_v45 }
 0x68f   : > { %v2001_v46 = vpop.xlane.xlu1 %2000 }
 0x690   : > { %v2033_v48 = vsub.f32 %v5219_v56, %v2001_v46  ;;  %v1998_v49 = vpop.xlane.xlu0 %1997 }
 0x691   : > { %v2032_v51 = vsub.f32 %v5221_v58, %v1998_v49 }
 0x692   : > { %v2056_v52 = vmul.f32 1.442695, %v2033_v48 }
 0x693   : > { %v2054_v54 = vmul.f32 1.442695, %v2032_v51  ;;  %v1995_v55 = vpop.xlane.xlu1 %1994 }
 0x694   : > { %4362 = vpow2.f32 %v2056_v52  ;;  %v2031_v57 = vsub.f32 %v5223_v59, %v1995_v55  ;;  %v1992_v61 = vpop.xlane.xlu0 %1991 }
 0x695   : > { %4364 = vpow2.f32 %v2054_v54  ;;  %v2030_v63 = vsub.f32 %v5227_v62, %v1992_v61 }
 0x696   : > { %v2052_v0 = vmul.f32 1.442695, %v2031_v57 }
 0x697   : > { %v2050_v1 = vmul.f32 1.442695, %v2030_v63  ;;  %v2013_v2 = vpop.xlane.xlu1 %2012 }
 0x698   : > { %4366 = vpow2.f32 %v2052_v0  ;;  %v2037_v3 = vsub.f32 %v5235_v5, %v2013_v2  ;;  %v2010_v56 = vpop.xlane.xlu0 %2009 }
 0x699   : > { %4368 = vpow2.f32 %v2050_v1  ;;  %v2036_v58 = vsub.f32 %v5237_v7, %v2010_v56 }
 0x69a   : > { %v2064_v4 = vmul.f32 1.442695, %v2037_v3 }
 0x69b   : > { %v2062_v6 = vmul.f32 1.442695, %v2036_v58  ;;  %v2007_v9 = vpop.xlane.xlu1 %2006 }
 0x69c   : > { %4370 = vpow2.f32 %v2064_v4  ;;  %v2035_v59 = vsub.f32 %v5239_v8, %v2007_v9  ;;  %v2004_v11 = vpop.xlane.xlu0 %2003  ;;  %v4280_v4 = vunpack.i.h.bf16 %v5194_v32 }
 0x69d   : > { %4372 = vpow2.f32 %v2062_v6  ;;  %v2034_v62 = vsub.f32 %v5243_v10, %v2004_v11  ;;  %v4279_v6 = vunpack.i.l.bf16 %v5194_v32 }
 0x69e   : > { %v5299_v12 = vpop.eup %4362  ;;  %v2060_v13 = vmul.f32 1.442695, %v2035_v59 }
 0x69f   : > { %v5301_v14 = vpop.eup %4364  ;;  %v2058_v5 = vmul.f32 1.442695, %v2034_v62  ;;  %v2025_v15 = vpop.xlane.xlu1 %2024  ;;  %v2095_v7 = vsel %vm1977_vm9, %v5299_v12, 0.0  ;;  %v4107_v11 = vpack.c.bf16 %v4280_v4, %v4279_v6 }
 0x6a0   : > { %4374 = vpow2.f32 %v2060_v13  ;;  %v2041_v16 = vsub.f32 %v5251_v17, %v2025_v15  ;;  %v2022_v18 = vpop.xlane.xlu0 %2021  ;;  %2096 = vadd.xlane.f32.xlu1 %v2095_v7  ;;  %v2092_v8 = vsel %vm1977_vm9, %v5301_v14, 0.0 }
 0x6a1   : > { %4376 = vpow2.f32 %v2058_v5  ;;  %v2040_v10 = vsub.f32 %v5253_v19, %v2022_v18  ;;  %2093 = vadd.xlane.f32.xlu0 %v2092_v8 }
 0x6a2   : > { %v5309_v21 = vpop.eup %4366  ;;  %v2072_v23 = vmul.f32 1.442695, %v2041_v16 }
 0x6a3   : > { %v5311_v24 = vpop.eup %4368  ;;  %v2070_v25 = vmul.f32 1.442695, %v2040_v10  ;;  %v2019_v26 = vpop.xlane.xlu1 %2018  ;;  %v2089_v27 = vsel %vm1977_vm9, %v5309_v21, 0.0 }
 0x6a4   : > { %4378 = vpow2.f32 %v2072_v23  ;;  %v2039_v17 = vsub.f32 %v5255_v20, %v2019_v26  ;;  %2090 = vadd.xlane.f32.xlu1 %v2089_v27  ;;  %v2016_v28 = vpop.xlane.xlu0 %2015  ;;  %v2086_v29 = vsel %vm1977_vm9, %v5311_v24, 0.0 }
 0x6a5   : > { %4380 = vpow2.f32 %v2070_v25  ;;  %v2038_v19 = vsub.f32 %v5259_v22, %v2016_v28  ;;  %2087 = vadd.xlane.f32.xlu0 %v2086_v29 }
 0x6a6   : > { %v5319_v30 = vpop.eup %4370  ;;  %v2068_v31 = vmul.f32 1.442695, %v2039_v17 }
 0x6a7   : > { %v5321_v34 = vpop.eup %4372  ;;  %v2066_v35 = vmul.f32 1.442695, %v2038_v19  ;;  %v2107_v36 = vsel %vm1977_vm9, %v5319_v30, 0.0  ;;  %v4293_v61 = vpop.permute.xlu1 %4292 }
 0x6a8   : > { %4382 = vpow2.f32 %v2068_v31  ;;  %2108 = vadd.xlane.f32.xlu1 %v2107_v36  ;;  %v4288_v20 = vpop.permute.xlu0 %4287  ;;  %v2104_v37 = vsel %vm1977_vm9, %v5321_v34, 0.0  ;;  %v4295_v62 = vunpack.i.h.bf16 %v4293_v61  ;;  %v4294_v13 = vunpack.i.l.bf16 %v4293_v61 }
 0x6a9   : > { %4384 = vpow2.f32 %v2066_v35  ;;  %v4290_v38 = vunpack.i.h.bf16 %v4288_v20  ;;  %v4289_v50 = vunpack.i.l.bf16 %v4288_v20  ;;  %2105 = vadd.xlane.f32.xlu0 %v2104_v37 }
 0x6aa   : > { %v5327_v22 = vpop.eup %4374 }
 0x6ab   : > { %v5329_v41 = vpop.eup %4376  ;;  %v5331_v39 = vpack.c.bf16 %v4290_v38, %v4289_v50  ;;  %v2101_v44 = vsel %vm1977_vm9, %v5327_v22, 0.0 }
 0x6ac   : > { %2102 = vadd.xlane.f32.xlu1 %v2101_v44  ;;  %v2098_v45 = vsel %vm1977_vm9, %v5329_v41, 0.0 }
 0x6ad   : > { %2099 = vadd.xlane.f32.xlu0 %v2098_v45  ;;  %4112 = vmatprep.subr.bf16.mxu0 %v5331_v39 }
 0x6ae   : > { %v5338_v46 = vpop.eup %4378 }
 0x6af   : > { %v5340_v48 = vpop.eup %4380  ;;  %v2119_v49 = vsel %vm1977_vm9, %v5338_v46, 0.0 }
 0x6b0   : > { %2120 = vadd.xlane.f32.xlu1 %v2119_v49  ;;  %v2116_v51 = vsel %vm1977_vm9, %v5340_v48, 0.0 }
 0x6b1   : > { %2117 = vadd.xlane.f32.xlu0 %v2116_v51 }
 0x6b2   : > { %v5346_v52 = vpop.eup %4382 }
 0x6b3   : > { %v5348_v54 = vpop.eup %4384  ;;  %v2113_v55 = vsel %vm1977_vm9, %v5346_v52, 0.0 }
 0x6b4   : > { %2114 = vadd.xlane.f32.xlu1 %v2113_v55  ;;  %v2110_v57 = vsel %vm1977_vm9, %v5348_v54, 0.0 }
 0x6b5   : > { %2111 = vadd.xlane.f32.xlu0 %v2110_v57 }
 0x6c5   : > { %4302 = vrot.lane.b32.xlu1 %v5134_v60, %s4660_s5 }
 0x6cb   : > { %4297 = vrot.lane.b32.xlu0 %v5120_v53, %s4660_s5  ;;  %s5676_s5 = sld [smem:[#allocation34_spill]] (!%p3790_p4) }
 0x6d8   : > { %v2085_v63 = vpop.xlane.xlu1 %2084 }
 0x6d9   : > { %v2082_v0 = vpop.xlane.xlu0 %2081 }
 0x6da   : > { %4386 = vrcp.f32 %v2082_v0 }
 0x6dc   : > { %v2079_v1 = vpop.xlane.xlu1 %2078 }
 0x6dd   : > { %4388 = vrcp.f32 %v2079_v1  ;;  %v2076_v2 = vpop.xlane.xlu0 %2075 }
 0x6de   : > { %4390 = vrcp.f32 %v2076_v2 }
 0x6df   : > { %4392 = vrcp.f32 %v2085_v63 }
 0x6e4   : > { %v4387_v3 = vpop.eup %4386 }
 0x6e5   : > { %v2127_v59 = vmul.f32 %v4387_v3, %v5277_v40 }
 0x6e7   : > { %v4389_v56 = vpop.eup %4388 }
 0x6e8   : > { %v4391_v58 = vpop.eup %4390  ;;  %v2125_v53 = vmul.f32 %v4389_v56, %v5281_v42 }
 0x6e9   : > { %v2123_v60 = vmul.f32 %v4391_v58, %v5285_v43  ;;  %v4393_v9 = vpop.eup %4392  ;;  %v4115_v43 = vpack.c.bf16 %v4295_v62, %v4294_v13 }
 0x6ea   : > { %v2129_v32 = vmul.f32 %v4393_v9, %v5275_v47 }
 0x6eb   : > { %3967 = vmatprep.mubr.msk.f32.mxu1 %vm1977_vm9, %v2123_v60  ;;  %v4338_v60 = vld [vmem:[%s5014_s30] sm:$0xff]  }
 0x6ec   : > { %3968 = vmatmul.mubr.msk.f32.vlgmr.msra.gmra.mrb[12].mxu1 %vm1977_vm9, %v2125_v53 }
 0x6ed   : > { %4102 = vmatpush3.bf16.msra.mxu1 %v5196_v33  ;;  %3974 = vmatprep.mubr.msk.f32.mxu1 %vm1977_vm9, %v2127_v59 }
 0x6ee   : > { %4108 = vmatprep.subr.bf16.mxu1 %v4107_v11 }
 0x6f0   : > { %3975 = vmatmul.mubr.msk.f32.vlgmr.msra.gmra.mrb[14].mxu1 %vm1977_vm9, %v2129_v32 }
 0x6f1   : > { %4110 = vmatpush3.bf16.msra.mxu1 %v4107_v11  ;;  %v4339_v11 = vld [vmem:[%s5014_s30 + $0x8] sm:$0xff]  }
 0x6f2   : > { %4116 = vmatprep.subr.bf16.mxu1 %v4115_v43 }
 0x72d   : > { %v2097_v42 = vpop.xlane.xlu1 %2096 }
 0x72e   : > { %4394 = vrcp.f32 %v2097_v42  ;;  %v2094_v40 = vpop.xlane.xlu0 %2093 }
 0x72f   : > { %4396 = vrcp.f32 %v2094_v40 }
 0x731   : > { %v2091_v5 = vpop.xlane.xlu1 %2090 }
 0x732   : > { %4398 = vrcp.f32 %v2091_v5  ;;  %v2088_v15 = vpop.xlane.xlu0 %2087 }
 0x733   : > { %4400 = vrcp.f32 %v2088_v15 }
 0x735   : > { %v2109_v7 = vpop.xlane.xlu1 %2108 }
 0x736   : > { %4402 = vrcp.f32 %v2109_v7  ;;  %v2106_v33 = vpop.xlane.xlu0 %2105 }
 0x737   : > { %4404 = vrcp.f32 %v2106_v33 }
 0x738   : > { %v4395_v16 = vpop.eup %4394 }
 0x739   : > { %v4397_v47 = vpop.eup %4396  ;;  %v2103_v18 = vpop.xlane.xlu1 %2102  ;;  %v2137_v23 = vmul.f32 %v4395_v16, %v5299_v12 }
 0x73a   : > { %4406 = vrcp.f32 %v2103_v18  ;;  %v2100_v8 = vpop.xlane.xlu0 %2099  ;;  %v2135_v10 = vmul.f32 %v4397_v47, %v5301_v14 }
 0x73b   : > { %4408 = vrcp.f32 %v2100_v8 }
 0x73c   : > { %v4399_v25 = vpop.eup %4398  ;;  %3988 = vmatprep.mubr.msk.f32.mxu1 %vm1977_vm9, %v2135_v10 }
 0x73d   : > { %v4401_v26 = vpop.eup %4400  ;;  %v2121_v27 = vpop.xlane.xlu1 %2120  ;;  %3989 = vmatmul.mubr.msk.f32.vlgmr.msra.gmra.mrb[16].mxu1 %vm1977_vm9, %v2137_v23  ;;  %v2133_v29 = vmul.f32 %v4399_v25, %v5309_v21 }
 0x73e   : > { %4410 = vrcp.f32 %v2121_v27  ;;  %4118 = vmatpush3.bf16.msra.mxu1 %v4115_v43  ;;  %v2118_v17 = vpop.xlane.xlu0 %2117  ;;  %v2131_v28 = vmul.f32 %v4401_v26, %v5311_v24 }
 0x73f   : > { %4412 = vrcp.f32 %v2118_v17 }
 0x740   : > { %v4403_v19 = vpop.eup %4402  ;;  %3981 = vmatprep.mubr.msk.f32.mxu0 %vm1977_vm9, %v2131_v28 }
 0x741   : > { %v4405_v12 = vpop.eup %4404  ;;  %v2115_v14 = vpop.xlane.xlu1 %2114  ;;  %3982 = vmatmul.mubr.msk.f32.vlgmr.msra.gmra.mrb[8].mxu0 %vm1977_vm9, %v2133_v29  ;;  %v2145_v36 = vmul.f32 %v4403_v19, %v5319_v30 }
 0x742   : > { %4414 = vrcp.f32 %v2115_v14  ;;  %4114 = vmatpush3.bf16.msra.mxu0 %v5331_v39  ;;  %v2112_v31 = vpop.xlane.xlu0 %2111  ;;  %v2143_v35 = vmul.f32 %v4405_v12, %v5321_v34 }
 0x743   : > { %4416 = vrcp.f32 %v2112_v31 }
 0x744   : > { %v4407_v24 = vpop.eup %4406  ;;  %4002 = vmatprep.mubr.msk.f32.mxu1 %vm1977_vm9, %v2143_v35 }
 0x745   : > { %v4409_v21 = vpop.eup %4408  ;;  %v4303_v20 = vpop.permute.xlu1 %4302  ;;  %4003 = vmatmul.mubr.msk.f32.vlgmr.msra.gmra.mrb[18].mxu1 %vm1977_vm9, %v2145_v36  ;;  %v2141_v39 = vmul.f32 %v4407_v24, %v5327_v22 }
 0x746   : > { %v4305_v37 = vunpack.i.h.bf16 %v4303_v20  ;;  %v4304_v38 = vunpack.i.l.bf16 %v4303_v20  ;;  %v4298_v50 = vpop.permute.xlu0 %4297  ;;  %v2139_v44 = vmul.f32 %v4409_v21, %v5329_v41 }
 0x747   : > { %v4300_v45 = vunpack.i.h.bf16 %v4298_v50  ;;  %v4299_v49 = vunpack.i.l.bf16 %v4298_v50 }
 0x748   : > { %v4411_v34 = vpop.eup %4410  ;;  %v4123_v51 = vpack.c.bf16 %v4305_v37, %v4304_v38  ;;  %3995 = vmatprep.mubr.msk.f32.mxu0 %vm1977_vm9, %v2139_v44 }
 0x749   : > { %v4413_v30 = vpop.eup %4412  ;;  %v4119_v55 = vpack.c.bf16 %v4300_v45, %v4299_v49  ;;  %3996 = vmatmul.mubr.msk.f32.vlgmr.msra.gmra.mrb[10].mxu0 %vm1977_vm9, %v2141_v39  ;;  %v2153_v41 = vmul.f32 %v4411_v34, %v5338_v46 }
 0x74a   : > { %4124 = vmatprep.subr.bf16.mxu1 %v4123_v51  ;;  %v2151_v57 = vmul.f32 %v4413_v30, %v5340_v48  ;;  %v3771_v30 = vld [vmem:[%s5672_s2] ss:$0 sm:$0xff] }
 0x74b   : > { %4120 = vmatprep.subr.bf16.mxu0 %v4119_v55  ;;  %4126 = vmatpush3.bf16.msra.mxu1 %v4123_v51 }
 0x74c   : > { %v4415_v61 = vpop.eup %4414  ;;  %4122 = vmatpush3.bf16.msra.mxu0 %v4119_v55  ;;  %4016 = vmatprep.mubr.msk.f32.mxu1 %vm1977_vm9, %v2151_v57 }
 0x74d   : > { %v4417_v22 = vpop.eup %4416  ;;  %v2149_v0 = vmul.f32 %v4415_v61, %v5346_v52  ;;  %4019 = vmatprep.subr.bf16.mxu0 %v4338_v60 }
 0x74e   : > { %4017 = vmatmul.mubr.msk.f32.vlgmr.msra.gmra.mrb[20].mxu1 %vm1977_vm9, %v2153_v41  ;;  %v2147_v63 = vmul.f32 %v4417_v22, %v5348_v54 }
 0x750   : > { %4009 = vmatprep.mubr.msk.f32.mxu0 %vm1977_vm9, %v2147_v63 }
 0x751   : > { %4010 = vmatmul.mubr.msk.f32.vlgmr.msra.gmra.mrb[12].mxu0 %vm1977_vm9, %v2149_v0  ;;  %v4426_v0 = vld [vmem:[#allocation2] sm:$0xff] }
 0x752   : > { %4020 = vmatpush3.bf16.msra.mxu0 %v4338_v60 }
 0x753   : > { %4021 = vmatprep.subr.bf16.mxu0 %v4339_v11 }
 0x756   : > { %4022 = vmatpush3.bf16.msra.mxu0 %v4339_v11 }
 0x7bf   : > { %v3969_v48 = vpop.f32.mrb[12].mxu1 }
 0x7c0   : > { %v2232_v1 = vpop.f32.mrb[13].mxu1 }
 0x7c3   : > { %v3976_v2 = vpop.f32.mrb[14].mxu1 }
 0x7c4   : > { %v2319_v3 = vpop.f32.mrb[15].mxu1 }
 0x810   : > { %v3990_v46 = vpop.f32.mrb[16].mxu1 }
 0x811   : > { %v2493_v56 = vpop.f32.mrb[17].mxu1 }
 0x812   : > { %v4306_v58 = vpack.i.bf16 %v3990_v46, %v2493_v56  ;;  %v4428_v56 = vld [vmem:[#allocation2 + $0x8] sm:$0xff] }
 0x814   : > { %4307 = vrot.lane.b32.xlu1 %v4306_v58, %s4661_s17  ;;  %v3983_v4 = vpop.f32.mrb[8].mxu0 }
 0x815   : > { %v2406_v6 = vpop.f32.mrb[9].mxu0 }
 0x816   : > { %v4311_v54 = vpack.i.bf16 %v3983_v4, %v2406_v6 }
 0x818   : > { %4312 = vrot.lane.b32.xlu0 %v4311_v54, %s4661_s17  ;;  %v4004_v52 = vpop.f32.mrb[18].mxu1  ;;  %v4429_v54 = vld [vmem:[#allocation2 + $0x18] sm:$0xff] }
 0x819   : > { %v2667_v53 = vpop.f32.mrb[19].mxu1 }
 0x81a   : > { %v4316_v9 = vpack.i.bf16 %v4004_v52, %v2667_v53 }
 0x81c   : > { %4317 = vrot.lane.b32.xlu1 %v4316_v9, %s4662_s18  ;;  %v3997_v59 = vpop.f32.mrb[10].mxu0 }
 0x81d   : > { %v2580_v62 = vpop.f32.mrb[11].mxu0 }
 0x81e   : > { %v4321_v13 = vpack.i.bf16 %v3997_v59, %v2580_v62 }
 0x820   : > { %4322 = vrot.lane.b32.xlu0 %v4321_v13, %s4662_s18 }
 0x821   : > { %v4018_v32 = vpop.f32.mrb[20].mxu1 }
 0x822   : > { %v2841_v43 = vpop.f32.mrb[21].mxu1 }
 0x823   : > { %v4331_v42 = vpack.i.bf16 %v4018_v32, %v2841_v43 }
 0x824   : > { %v4011_v40 = vpop.f32.mrb[12].mxu0 }
 0x825   : > { %4332 = vrot.lane.b32.xlu1 %v4331_v42, %s4663_s23  ;;  %v2754_v5 = vpop.f32.mrb[13].mxu0 }
 0x826   : > { %v4326_v15 = vpack.i.bf16 %v4011_v40, %v2754_v5 }
 0x828   : > { %4327 = vrot.lane.b32.xlu0 %v4326_v15, %s4663_s23  ;;  %s5677_s23 = sld [smem:[#allocation36_spill]] (!%p3790_p4) }
 0x886   : > { %v4308_v7 = vpop.permute.xlu1 %4307 }
 0x887   : > { %v4310_v47 = vunpack.i.h.bf16 %v4308_v7  ;;  %v4309_v18 = vunpack.i.l.bf16 %v4308_v7 }
 0x889   : > { %v2901_v26 = vsel %vm1268_vm7, %v3976_v2, %v4310_v47  ;;  %v2900_v27 = vsel %vm1268_vm7, %v2319_v3, %v4309_v18  ;;  %v4427_v2 = vld [vmem:[#allocation2 + $0x10] sm:$0xff] }
 0x88a   : > { %v4313_v33 = vpop.permute.xlu0 %4312 }
 0x88b   : > { %v4315_v25 = vunpack.i.h.bf16 %v4313_v33  ;;  %v4314_v17 = vunpack.i.l.bf16 %v4313_v33 }
 0x88d   : > { %v2899_v36 = vsel %vm1268_vm7, %v3969_v48, %v4315_v25  ;;  %v2898_v37 = vsel %vm1268_vm7, %v2232_v1, %v4314_v17  ;;  %v4342_v17 = vld [vmem:[%s5041_s19] sm:$0xff]  }
 0x88e   : > { %v4318_v16 = vpop.permute.xlu1 %4317  ;;  %4035 = vmatprep.subr.bf16.mxu0 %v4342_v17 }
 0x88f   : > { %v4320_v8 = vunpack.i.h.bf16 %v4318_v16  ;;  %v4319_v10 = vunpack.i.l.bf16 %v4318_v16 }
 0x891   : > { %v2905_v31 = vsel %vm1977_vm9, %v2901_v26, %v4320_v8  ;;  %v2904_v35 = vsel %vm1977_vm9, %v2900_v27, %v4319_v10  ;;  %v4340_v26 = vld [vmem:[%s5027_s27] sm:$0xff]   ;;  %v4341_v27 = vld [vmem:[%s5027_s27 + $0x8] sm:$0xff]  }
 0x892   : > { %v4323_v23 = vpop.permute.xlu0 %4322  ;;  %4027 = vmatprep.subr.bf16.mxu1 %v4340_v26 }
 0x893   : > { %v4325_v29 = vunpack.i.h.bf16 %v4323_v23  ;;  %v4324_v19 = vunpack.i.l.bf16 %v4323_v23  ;;  %4028 = vmatpush3.bf16.msra.mxu1 %v4340_v26 }
 0x894   : > { %4029 = vmatprep.subr.bf16.mxu1 %v4341_v27 }
 0x895   : > { %v2903_v39 = vsel %vm1977_vm9, %v2899_v36, %v4325_v29  ;;  %v2902_v45 = vsel %vm1977_vm9, %v2898_v37, %v4324_v19 }
 0x897   : > { %v4333_v28 = vpop.permute.xlu1 %4332  ;;  %4030 = vmatpush3.bf16.msra.mxu1 %v4341_v27 }
 0x898   : > { %v4335_v12 = vunpack.i.h.bf16 %v4333_v28  ;;  %v4334_v14 = vunpack.i.l.bf16 %v4333_v28  ;;  %v4343_v28 = vld [vmem:[%s5041_s19 + $0x8] sm:$0xff]  }
 0x89a   : > { %v2910_v24 = vsel %vm2906_vm10, %v2905_v31, %v4335_v12  ;;  %v2909_v21 = vsel %vm2906_vm10, %v2904_v35, %v4334_v14  ;;  %v4328_v20 = vpop.permute.xlu0 %4327 }
 0x89b   : > { %v2912_v38 = vpack.c.bf16 %v2910_v24, %v2909_v21  ;;  %v4330_v50 = vunpack.i.h.bf16 %v4328_v20  ;;  %v4329_v44 = vunpack.i.l.bf16 %v4328_v20 }
 0x89d   : > { %v2908_v49 = vsel %vm2906_vm10, %v2903_v39, %v4330_v50  ;;  %v2907_v34 = vsel %vm2906_vm10, %v2902_v45, %v4329_v44  ;;  %v3776_v44 = vld [vmem:[%s5673_s1] ss:$0 sm:$0xff]  ;;  %s4665_s1 = smov (!%p3790_p4), 16  }
 0x89e   : > { %v2911_v51 = vpack.c.bf16 %v2908_v49, %v2907_v34 }
 0x8a0   : > { %4023 = vmatprep.mubr.msk.bf16.mxu0 %vm1082_vm6, %v2911_v51 }
 0x8a1   : > { %4024 = vmatmul.mubr.msk.bf16.vlgmr.msra.gmra.mrb[16].mxu0 %vm1082_vm6, %v2912_v38 }
 0x8a2   : > { %4036 = vmatpush3.bf16.msra.mxu0 %v4342_v17 }
 0x8a3   : > { %4037 = vmatprep.subr.bf16.mxu0 %v4343_v28 }
 0x8a6   : > { %4038 = vmatpush3.bf16.msra.mxu0 %v4343_v28 }
 0x974   : > { %v4025_v55 = vpop.f32.mrb[16].mxu0 }
 0x975   : > { %v2976_v57 = vpop.f32.mrb[17].mxu0  ;;  %v2985_v61 = vadd.f32 %v4025_v55, %v3771_v30 }
 0x976   : > { %v2977_v41 = vadd.f32 %v3771_v30, %v2976_v57  ;;  %v4026_v22 = vpop.f32.mrb[18].mxu0 }
 0x977   : > { %v2979_v63 = vpop.f32.mrb[19].mxu0  ;;  %v5417_v3 = vadd.f32 %v4427_v2, %v2985_v61  ;;  %v2988_v46 = vadd.f32 %v4026_v22, %v3771_v30 }
 0x978   : > { %v5415_v48 = vadd.f32 %v4426_v0, %v2977_v41  ;;  %v2980_v1 = vadd.f32 %v3771_v30, %v2979_v63  ;;  %v3777_v30 = vld [vmem:[%s914_s24] ss:$0 sm:$0xff] }
 0x979   : > { %v5425_v52 = vadd.f32 %v4429_v54, %v2988_v46  ;;  %v3003_v60 = vsel %vm1082_vm6, %v5417_v3, 0.0  ;;  %v4345_v54 = vld [vmem:[%s5041_s19 + $0x18] sm:$0xff]  }
 0x97a   : > { %v5419_v58 = vadd.f32 %v4428_v56, %v2980_v1  ;;  %v2997_v4 = vsel %vm1082_vm6, %v5415_v48, 0.0 }
 0x97b   : > { %2998 = vadd.xlane.f32.xlu0 %v2997_v4  ;;  %v3006_v53 = vsel %vm1082_vm6, %v5425_v52, 0.0 }
 0x97c   : > { %v3000_v6 = vsel %vm1082_vm6, %v5419_v58, 0.0 }
 0x97d   : > { %3001 = vadd.xlane.f32.xlu1 %v3000_v6  ;;  %v4344_v6 = vld [vmem:[%s5041_s19 + $0x10] sm:$0xff]  }
 0x97e   : > { %4039 = vmatprep.subr.bf16.mxu0 %v4344_v6 }
 0x97f   : > { %3004 = vadd.xlane.f32.xlu0 %v3003_v60  ;;  %4040 = vmatpush3.bf16.msra.mxu0 %v4344_v6  ;;  %v3778_v60 = vld [vmem:[%s922_s14] ss:$0 sm:$0xff] }
 0x980   : > { %4041 = vmatprep.subr.bf16.mxu0 %v4345_v54 }
 0x983   : > { %3007 = vadd.xlane.f32.xlu0 %v3006_v53  ;;  %4042 = vmatpush3.bf16.msra.mxu0 %v4345_v54 }
 0xa08   : > { %v2999_v9 = vpop.xlane.xlu0 %2998 }
 0xa09   : > { %v3009_v59 = vmul.f32 0.03125, %v2999_v9 }
 0xa0a   : > { %v3002_v11 = vpop.xlane.xlu1 %3001 }
 0xa0b   : > { %v3013_v62 = vsub.f32 %v5415_v48, %v3009_v59  ;;  %v3010_v13 = vmul.f32 0.03125, %v3002_v11 }
 0xa0c   : > { %v3005_v32 = vpop.xlane.xlu0 %3004 }
 0xa0d   : > { %v3014_v43 = vsub.f32 %v5419_v58, %v3010_v13  ;;  %v3011_v42 = vmul.f32 0.03125, %v3005_v32  ;;  %v3017_v40 = vmul.f32 %v3013_v62, %v3013_v62 }
 0xa0f   : > { %v3015_v5 = vsub.f32 %v5417_v3, %v3011_v42  ;;  %v3021_v15 = vsel %vm1082_vm6, %v3017_v40, 0.0  ;;  %v3018_v7 = vmul.f32 %v3014_v43, %v3014_v43 }
 0xa10   : > { %3022 = vadd.xlane.f32.xlu0 %v3021_v15  ;;  %v3008_v33 = vpop.xlane.xlu0 %3007 }
 0xa11   : > { %v3012_v16 = vmul.f32 0.03125, %v3008_v33  ;;  %v3024_v47 = vsel %vm1082_vm6, %v3018_v7, 0.0  ;;  %v3019_v18 = vmul.f32 %v3015_v5, %v3015_v5 }
 0xa12   : > { %3025 = vadd.xlane.f32.xlu1 %v3024_v47 }
 0xa13   : > { %v3016_v8 = vsub.f32 %v5425_v52, %v3012_v16  ;;  %v3027_v10 = vsel %vm1082_vm6, %v3019_v18, 0.0  ;;  %v3783_v16 = vld [vmem:[%s930_s7] ss:$0 sm:$0xff] }
 0xa14   : > { %3028 = vadd.xlane.f32.xlu0 %v3027_v10 }
 0xa15   : > { %v3020_v23 = vmul.f32 %v3016_v8, %v3016_v8 }
 0xa17   : > { %v3030_v25 = vsel %vm1082_vm6, %v3020_v23, 0.0 }
 0xa18   : > { %3031 = vadd.xlane.f32.xlu1 %v3030_v25 }
 0xa9d   : > { %v3023_v29 = vpop.xlane.xlu0 %3022 }
 0xa9e   : > { %v3033_v19 = vmul.f32 0.03125, %v3023_v29 }
 0xa9f   : > { %v3026_v12 = vpop.xlane.xlu1 %3025 }
 0xaa0   : > { %v3037_v14 = vadd.f32 1e-05, %v3033_v19  ;;  %v3034_v31 = vmul.f32 0.03125, %v3026_v12 }
 0xaa1   : > { %v3029_v35 = vpop.xlane.xlu0 %3028 }
 0xaa2   : > { %4418 = vrsqrt.f32 %v3037_v14  ;;  %v3038_v36 = vadd.f32 1e-05, %v3034_v31  ;;  %v3035_v24 = vmul.f32 0.03125, %v3029_v35 }
 0xaa4   : > { %4420 = vrsqrt.f32 %v3038_v36  ;;  %v3039_v21 = vadd.f32 1e-05, %v3035_v24 }
 0xaa5   : > { %v3032_v20 = vpop.xlane.xlu1 %3031 }
 0xaa6   : > { %4422 = vrsqrt.f32 %v3039_v21  ;;  %v3036_v37 = vmul.f32 0.03125, %v3032_v20 }
 0xaa8   : > { %v3040_v38 = vadd.f32 1e-05, %v3036_v37 }
 0xaaa   : > { %4424 = vrsqrt.f32 %v3040_v38 }
 0xaac   : > { %v4419_v50 = vpop.eup %4418 }
 0xaad   : > { %v3045_v39 = vmul.f32 %v4419_v50, %v3013_v62 }
 0xaae   : > { %v4421_v45 = vpop.eup %4420 }
 0xaaf   : > { %v3046_v49 = vmul.f32 %v4421_v45, %v3014_v43  ;;  %v3055_v34 = vmul.f32 %v3776_v44, %v3045_v39 }
 0xab0   : > { %v4423_v51 = vpop.eup %4422 }
 0xab1   : > { %v3047_v55 = vmul.f32 %v4423_v51, %v3015_v5  ;;  %v3056_v57 = vmul.f32 %v3776_v44, %v3046_v49  ;;  %v3065_v61 = vadd.f32 %v3777_v30, %v3055_v34 }
 0xab3   : > { %v3066_v41 = vadd.f32 %v3777_v30, %v3056_v57  ;;  %v3057_v63 = vmul.f32 %v3776_v44, %v3047_v55 }
 0xab4   : > { %v4425_v22 = vpop.eup %4424 }
 0xab5   : > { %v3048_v0 = vmul.f32 %v4425_v22, %v3016_v8  ;;  %v3069_v1 = vpack.c.bf16 %v3066_v41, %v3065_v61  ;;  %v3067_v46 = vadd.f32 %v3777_v30, %v3057_v63 }
 0xab7   : > { %v3058_v2 = vmul.f32 %v3776_v44, %v3048_v0  ;;  %4031 = vmatprep.mubr.msk.bf16.mxu1 %vm1082_vm6, %v3069_v1 }
 0xab9   : > { %v3068_v56 = vadd.f32 %v3777_v30, %v3058_v2 }
 0xabb   : > { %v3070_v4 = vpack.c.bf16 %v3068_v56, %v3067_v46 }
 0xabd   : > { %4032 = vmatmul.mubr.msk.bf16.vlgmr.msra.gmra.mrb[24].mxu1 %vm1082_vm6, %v3070_v4 }
 0xb90   : > { %v4033_v53 = vpop.f32.mrb[24].mxu1 }
 0xb91   : > { %v3143_v9 = vadd.f32 %v4033_v53, %v3778_v60  ;;  %v3134_v59 = vpop.f32.mrb[25].mxu1  ;;  %v3791_v53 = vld [vmem:[%s5675_s4] ss:$0 sm:$0xff] (!%p3790_p4) }
 0xb92   : > { %v3135_v11 = vadd.f32 %v3778_v60, %v3134_v59  ;;  %v4034_v62 = vpop.f32.mrb[26].mxu1  ;;  %v3792_v59 = vld [vmem:[%s5676_s5] ss:$0 sm:$0xff] (!%p3790_p4) }
 0xb93   : > { %v3146_v13 = vadd.f32 %v4034_v62, %v3778_v60  ;;  %v3137_v32 = vpop.f32.mrb[27].mxu1  ;;  %v3151_v42 = vmax.f32 %v3143_v9, 0.0 }
 0xb94   : > { %v3138_v43 = vadd.f32 %v3778_v60, %v3137_v32  ;;  %v3149_v5 = vmax.f32 %v3135_v11, 0.0 }
 0xb95   : > { %v3152_v40 = vmax.f32 %v3146_v13, 0.0  ;;  %v3373_v13 = vld [vmem:[%s5677_s23] sm:$0xff] (!%p3790_p4) }
 0xb96   : > { %v3150_v15 = vmax.f32 %v3138_v43, 0.0 }
 0xb97   : > { %v3154_v7 = vpack.c.bf16 %v3152_v40, %v3151_v42 }
 0xb98   : > { %v3153_v33 = vpack.c.bf16 %v3150_v15, %v3149_v5 }
 0xb9a   : > { %4043 = vmatprep.mubr.msk.bf16.mxu0 %vm3194_vm11, %v3153_v33  ;;  %v3374_v33 = vld [vmem:[%s5677_s23 + $0x8] sm:$0xff] (!%p3790_p4) }
 0xb9b   : > { %4044 = vmatmul.mubr.msk.bf16.vlgmr.msra.gmra.mrb[20].mxu0 %vm3194_vm11, %v3154_v7 }
 0xc6e   : > { %v4045_v47 = vpop.f32.mrb[20].mxu0 }
 0xc6f   : > { %v3244_v18 = vadd.f32 %v4045_v47, %v3783_v16  ;;  %v3235_v8 = vpop.f32.mrb[21].mxu0 }
 0xc70   : > { %v3236_v10 = vadd.f32 %v3783_v16, %v3235_v8  ;;  %v4046_v23 = vpop.f32.mrb[22].mxu0  ;;  %3261 = sbr.rel (%p3790_p4) target bundleno = 3932 (0xf5c), region = 128 }
 0xc71   : > { %v5468_v25 = vadd.f32 %v3244_v18, %v5417_v3  ;;  %v3247_v26 = vadd.f32 %v4046_v23, %v3783_v16  ;;  %v3238_v27 = vpop.f32.mrb[23].mxu0 }
 0xc72   : > { %v5471_v17 = vadd.f32 %v3236_v10, %v5415_v48  ;;  %v3239_v28 = vadd.f32 %v3783_v16, %v3238_v27 }
 0xc73   : > { %3256 = vst.msk [vmem:[#allocation2 + $0x10] sm:$0xff] %vm1082_vm6, %v5468_v25  ;;  %v5476_v29 = vadd.f32 %v3247_v26, %v5425_v52  ;;  %v3270_v3 = vsel (!%p3790_p4), %vm1082_vm6, %v5468_v25, 0.0 }
 0xc74   : > { %3254 = vst.msk [vmem:[#allocation2] sm:$0xff] %vm1082_vm6, %v5471_v17  ;;  %v5481_v19 = vadd.f32 %v3239_v28, %v5419_v58  ;;  %v3264_v48 = vsel (!%p3790_p4), %vm1082_vm6, %v5471_v17, 0.0  ;;  %3271 = vadd.xlane.f32.xlu1 (!%p3790_p4), %v3270_v3 }
 0xc75   : > { %3257 = vst.msk [vmem:[#allocation2 + $0x18] sm:$0xff] %vm1082_vm6, %v5476_v29  ;;  %3265 = vadd.xlane.f32.xlu0 (!%p3790_p4), %v3264_v48  ;;  %v3273_v52 = vsel (!%p3790_p4), %vm1082_vm6, %v5476_v29, 0.0 }
 0xc76   : > { %3255 = vst.msk [vmem:[#allocation2 + $0x8] sm:$0xff] %vm1082_vm6, %v5481_v19  ;;  %v3267_v58 = vsel (!%p3790_p4), %vm1082_vm6, %v5481_v19, 0.0 }
 0xc78   : > { %3274 = vadd.xlane.f32.xlu1 %v3273_v52 }
 0xc79   : > { %3268 = vadd.xlane.f32.xlu0 %v3267_v58 }
 0xd01   : > { %v3272_v14 = vpop.xlane.xlu1 %3271 }
 0xd02   : > { %v3266_v12 = vpop.xlane.xlu0 %3265  ;;  %v3278_v35 = vmul.f32 0.03125, %v3272_v14 }
 0xd03   : > { %v3276_v31 = vmul.f32 0.03125, %v3266_v12  ;;  %v3793_v12 = vld [vmem:[%s5678_s15] ss:$0 sm:$0xff] }
 0xd04   : > { %v3282_v24 = vsub.f32 %v5468_v25, %v3278_v35  ;;  %v3343_v14 = vmul.f32 %v3793_v12, %v5471_v17 }
 0xd05   : > { %v3280_v36 = vsub.f32 %v5471_v17, %v3276_v31  ;;  %v3275_v20 = vpop.xlane.xlu1 %3274  ;;  %v3345_v31 = vmul.f32 %v3793_v12, %v5468_v25 }
 0xd06   : > { %v3269_v21 = vpop.xlane.xlu0 %3268  ;;  %v3279_v38 = vmul.f32 0.03125, %v3275_v20  ;;  %v3286_v44 = vmul.f32 %v3282_v24, %v3282_v24  ;;  %v3347_v35 = vsel %vm1082_vm6, %v3343_v14, 0.0  ;;  %v3395_v20 = vlaneseq }
 0xd07   : > { %v3277_v37 = vmul.f32 0.03125, %v3269_v21  ;;  %v3284_v50 = vmul.f32 %v3280_v36, %v3280_v36  ;;  %v3794_v21 = vld [vmem:[#allocation3] ss:$0 sm:$0xff] }
 0xd08   : > { %v3283_v45 = vsub.f32 %v5476_v29, %v3279_v38  ;;  %v3294_v34 = vsel %vm1082_vm6, %v3286_v44, 0.0  ;;  %v3398_v44 = vshrl.u32 %v3395_v20, 7 }
 0xd09   : > { %v3281_v39 = vsub.f32 %v5481_v19, %v3277_v37  ;;  %v3288_v49 = vsel %vm1082_vm6, %v3284_v50, 0.0  ;;  %v3396_v37 = vand.u32 127, %v3395_v20 }
 0xd0a   : > { %3289 = vadd.xlane.f32.xlu0 %v3288_v49  ;;  %v3287_v30 = vmul.f32 %v3283_v45, %v3283_v45 }
 0xd0b   : > { %v3285_v51 = vmul.f32 %v3281_v39, %v3281_v39  ;;  %v3401_v38 = vadd.s32 4294967288, %v3396_v37 }
 0xd0c   : > { %v3297_v57 = vsel %vm1082_vm6, %v3287_v30, 0.0 }
 0xd0d   : > { %v3291_v55 = vsel %vm1082_vm6, %v3285_v51, 0.0 }
 0xd0e   : > { %3295 = vadd.xlane.f32.xlu0 %v3294_v34  ;;  %3292 = vadd.xlane.f32.xlu1 %v3291_v55 }
 0xd12   : > { %3298 = vadd.xlane.f32.xlu1 %v3297_v57 }
 0xd97   : > { %v3290_v61 = vpop.xlane.xlu0 %3289 }
 0xd98   : > { %v3300_v41 = vmul.f32 0.03125, %v3290_v61 }
 0xd9a   : > { %v3304_v22 = vadd.f32 1e-05, %v3300_v41  ;;  %v3344_v41 = vmul.f32 %v3793_v12, %v5481_v19 }
 0xd9b   : > { %v3293_v63 = vpop.xlane.xlu1 %3292  ;;  %v3296_v0 = vpop.xlane.xlu0 %3295 }
 0xd9c   : > { %4432 = vrsqrt.f32 %v3304_v22  ;;  %v3301_v1 = vmul.f32 0.03125, %v3293_v63  ;;  %v3302_v2 = vmul.f32 0.03125, %v3296_v0  ;;  %v3350_v0 = vsel %vm1082_vm6, %v3344_v41, 0.0 }
 0xd9e   : > { %v3305_v46 = vadd.f32 1e-05, %v3301_v1  ;;  %v3306_v56 = vadd.f32 1e-05, %v3302_v2  ;;  %v3346_v1 = vmul.f32 %v3793_v12, %v5476_v29 }
 0xd9f   : > { %v3299_v4 = vpop.xlane.xlu1 %3298 }
 0xda0   : > { %4434 = vrsqrt.f32 %v3305_v46  ;;  %v3303_v6 = vmul.f32 0.03125, %v3299_v4  ;;  %v3356_v2 = vsel %vm1082_vm6, %v3346_v1, 0.0  ;;  %v3795_v46 = vld [vmem:[#allocation4] ss:$0 sm:$0xff] }
 0xda1   : > { %4436 = vrsqrt.f32 %v3306_v56 }
 0xda2   : > { %v3307_v54 = vadd.f32 1e-05, %v3303_v6 }
 0xda4   : > { %4438 = vrsqrt.f32 %v3307_v54 }
 0xda6   : > { %v4433_v60 = vpop.eup %4432 }
 0xda7   : > { %v3312_v9 = vmul.f32 %v4433_v60, %v3280_v36  ;;  %v3353_v36 = vsel %vm1082_vm6, %v3345_v31, 0.0 }
 0xda9   : > { %v3322_v11 = vmul.f32 %v3791_v53, %v3312_v9 }
 0xdaa   : > { %v4435_v62 = vpop.eup %4434 }
 0xdab   : > { %v4437_v32 = vpop.eup %4436  ;;  %v3332_v43 = vadd.f32 %v3792_v59, %v3322_v11  ;;  %v3313_v42 = vmul.f32 %v4435_v62, %v3281_v39  ;;  %v3404_v39 = vsub.s32 %v3401_v38, %v3398_v44 }
 0xdac   : > { %v3314_v40 = vmul.f32 %v4437_v32, %v3282_v24  ;;  %v4664_v24 = vmov 0  }
 0xdad   : > { %v3375_v5 = vmul.f32 %v3373_v13, %v3332_v43  ;;  %v3323_v15 = vmul.f32 %v3791_v53, %v3313_v42  ;;  %4430 = vset.pattern.permute.xlu1 %v4664_v24  ;;  %4431 = vset.pattern.permute.xlu0 %v4664_v24 }
 0xdae   : > { %v4439_v7 = vpop.eup %4438  ;;  %v3324_v16 = vmul.f32 %v3791_v53, %v3314_v40 }
 0xdaf   : > { %v3379_v47 = vsel %vm1082_vm6, %v3375_v5, 0.0  ;;  %v3333_v18 = vadd.f32 %v3792_v59, %v3323_v15  ;;  %v3315_v8 = vmul.f32 %v4439_v7, %v3283_v45  ;;  %v3399_v45 = vsub.s32 %v3396_v37, %v3398_v44 }
 0xdb0   : > { %3380 = vadd.xlane.f32.xlu0 %v3379_v47  ;;  %v3334_v10 = vadd.f32 %v3792_v59, %v3324_v16 }
 0xdb1   : > { %v3376_v23 = vmul.f32 %v3374_v33, %v3333_v18  ;;  %v3325_v26 = vmul.f32 %v3791_v53, %v3315_v8 }
 0xdb2   : > { %v3377_v27 = vmul.f32 %v3373_v13, %v3334_v10 }
 0xdb3   : > { %v3382_v28 = vsel %vm1082_vm6, %v3376_v23, 0.0  ;;  %v3335_v48 = vadd.f32 %v3792_v59, %v3325_v26 }
 0xdb4   : > { %3383 = vadd.xlane.f32.xlu1 %v3382_v28  ;;  %v3385_v3 = vsel %vm1082_vm6, %v3377_v27, 0.0 }
 0xdb5   : > { %3386 = vadd.xlane.f32.xlu0 %v3385_v3  ;;  %v3378_v58 = vmul.f32 %v3374_v33, %v3335_v48 }
 0xdb7   : > { %v3388_v52 = vsel %vm1082_vm6, %v3378_v58, 0.0 }
 0xdb8   : > { %3389 = vadd.xlane.f32.xlu1 %v3388_v52 }
 0xdbc   : > { %3348 = vadd.xlane.f32.xlu1 %v3347_v35 }
 0xdc0   : > { %3354 = vadd.xlane.f32.xlu1 %v3353_v36 }
 0xdd1   : > { %3366 = vperm.xlu1 %4430, %v3794_v21  }
 0xe3d   : > { %v3381_v50 = vpop.xlane.xlu0 %3380 }
 0xe3e   : > { %v3400_v51 = vrot.slane %v3381_v50, %v3399_v45 }
 0xe41   : > { %v3384_v17 = vpop.xlane.xlu1 %3383 }
 0xe42   : > { %v3387_v25 = vpop.xlane.xlu0 %3386  ;;  %v3405_v49 = vrot.slane %v3384_v17, %v3404_v39 }
 0xe43   : > { %v3411_v30 = vrot.slane %v3387_v25, %v3399_v45 }
 0xe44   : > { %v3407_v57 = vsel %vm3406_vm12, %v3405_v49, %v3400_v51 }
 0xe45   : > { %v3390_v34 = vpop.xlane.xlu1 %3389 }
 0xe46   : > { %v3415_v55 = vrot.slane %v3390_v34, %v3404_v39 }
 0xe48   : > { %v3416_v61 = vsel %vm3406_vm12, %v3415_v55, %v3411_v30 }
 0xe49   : > { %v3418_v22 = vsel %vm3417_vm13, %v3416_v61, %v3407_v57  ;;  %v3349_v19 = vpop.xlane.xlu1 %3348 }
 0xe4a   : > { %v3421_v63 = vsel %vm3420_vm14, %v3418_v22, 0.0 }
 0xe4b   : > { %3422 = vadd.xlane.f32.xlu0 %v3421_v63 }
 0xe4d   : > { %v3355_v54 = vpop.xlane.xlu1 %3354 }
 0xe4f   : > { %3351 = vadd.xlane.f32.xlu0 %v3350_v0 }
 0xe51   : > { %v3367_v53 = vpop.permute.xlu1 %3366 }
 0xe52   : > { %v3369_v59 = vadd.f32 %v3367_v53, %v3349_v19  ;;  %v3371_v62 = vadd.f32 %v3367_v53, %v3355_v54 }
 0xe53   : > { %3357 = vadd.xlane.f32.xlu0 %v3356_v2 }
 0xe54   : > { %v3440_v13 = vrot.slane %v3369_v59, %v3399_v45  ;;  %v3449_v43 = vrot.slane %v3371_v62, %v3399_v45 }
 0xed8   : > { %v3423_v56 = vpop.xlane.xlu0 %3422 }
 0xed9   : > { %v3431_v4 = vadd.f32 %v3795_v46, %v3423_v56 }
 0xedb   : > { %4440 = vtanh.f32 %v3431_v4 }
 0xedc   : > { %v3352_v60 = vpop.xlane.xlu0 %3351 }
 0xedd   : > { %v3370_v11 = vadd.f32 %v3367_v53, %v3352_v60 }
 0xedf   : > { %v3444_v32 = vrot.slane %v3370_v11, %v3404_v39 }
 0xee0   : > { %v3358_v9 = vpop.xlane.xlu0 %3357 }
 0xee1   : > { %v3372_v29 = vadd.f32 %v3367_v53, %v3358_v9  ;;  %v3445_v40 = vsel %vm3406_vm12, %v3444_v32, %v3440_v13 }
 0xee3   : > { %v3453_v42 = vrot.slane %v3372_v29, %v3404_v39 }
 0xee5   : > { %v4441_v6 = vpop.eup %4440  ;;  %v3454_v5 = vsel %vm3406_vm12, %v3453_v42, %v3449_v43 }
 0xee6   : > { %3458 = vrot.lane.b32.xlu0 %v4441_v6, %s4665_s1  ;;  %v3455_v15 = vsel %vm3417_vm13, %v3454_v5, %v3445_v40 }
 0xf58   : > { %v3459_v7 = vpop.permute.xlu0 %3458 }
 0xf59   : > { %v3461_v33 = vsel %vm1977_vm9, %v3455_v15, %v3459_v7 }
 0xf5a   : > { %v3463_v16 = vsel %vm3462_vm15, %v3461_v33, 0.0 }
 0xf5b   : > { %3464 = vst [vmem:[#allocation13] sm:$0x3] %v3463_v16 }
 0xf5c PF: > { %p4160_p7 = scmp.eq.s32.totalorder %s4877_s29, 1  ;;  %s4666_s16 = smov [#allocation13]  }
 0xf5d   : > { %s3474_s3 = sshll.u32 %s4666_s16, 4  ;;  %s3475_s3 = int_to_ptr.vmem [resolvable:$true] %s3474_s3 }
 0xf5e   : > { %s4560_s24 = scalar_lea.vmem %s3475_s3, 32  ;;  %p4567_p13 = scmp.lt.s32.totalorder %s3475_s3, %s3475_s3 }
 0xf5f   : > { %p4561_p9 = scmp.ne.s32.totalorder %s3475_s3, %s4560_s24  ;;  %p4568_p0 = scmp.lt.s32.totalorder %s4560_s24, %s4560_s24 }
 0xf61   : > { %p4562_p10 = pnand %p4561_p9, %p4160_p7  ;;  %p4569_p2 = por %p4568_p0, %p4567_p13 }
 0xf63   : > { %p4563_p8 = pneg %p4562_p10 }
 0xf65   : > { %p4570_p11 = pnand %p4569_p2, %p4563_p8 }
 0xf67   : > { %4573 = shalt.err (!%p4570_p11)
}
 0xf68   : > { %s5679_s14 = sld [smem:[#allocation37_spill]] }
 0xf6e   : > { %s4574_s13 = scalar_lea.hbm %s5679_s14, 32 }
 0xf6f   : > { %p4575_p3 = scmp.ne.s32.totalorder %s5679_s14, %s4574_s13  ;;  %p4580_p5 = scmp.lt.u32.totalorder %s4574_s13, %s5679_s14 }
 0xf71   : > { %p4576_p12 = pnand %p4575_p3, %p4160_p7 }
 0xf73   : > { %p4577_p6 = pneg %p4576_p12 }
 0xf75   : > { %p4582_p1 = pnand %p4580_p5, %p4577_p6 }
 0xf77   : > { %4585 = shalt.err (!%p4582_p1)
}
 0xf78   : > { %4140 = dma.vmem_to_hbm [thread:$0]  (%p4160_p7), %s3475_s3, 32, %s5679_s14, [#allocation7]  }
 0xf79   : > { %4623 = dma.done.wait (%p4160_p7), [#allocation7], 32  }
 0xf7a   : > { %4625 = vsyncadd (%p4160_p7), [#allocation7], 4294967264 }
 0xf7b PF: > { %s5680_s17 = sld [smem:[#allocation20_spill]]  ;;  %s5681_s18 = sld [smem:[#allocation18_spill]] }
 0xf7c   : > { %s5682_s29 = sld [smem:[#allocation22_spill]]  ;;  %s5683_s0 = sld [smem:[#allocation19_spill]] }
 0xf7d   : > { %s5684_s30 = sld [smem:[#allocation21_spill]]  ;;  %s5685_s3 = smov %s4632_s28 }
 0xf81   : > { %s43_s4 = sadd.s32 1, %s5680_s17   ;;  %s5686_s28 = smov %s5681_s18 }
 0xf82   : > { %p40_p4 = scmp.ge.s32.totalorder %s43_s4, 4  }
 0xf83   : > { %s5687_s18 = smov %s5684_s30 }
 0xf84   :  { %42 = sbr.rel (!%p40_p4) target bundleno = 24 (0x18), region = 209 }
 0xf8b   :  { %3487 = vsyncpa [#allocation6], 1 }
 0xf8c   :  { %3489 = vsyncpa [#allocation6 + $0x1], 1 }
 0xf8d   :  { %3490 = vsyncpa [#allocation9], 1 }
 0xf8e   :  { %3492 = vsyncpa [#allocation9 + $0x1], 1 }
 0xf8f   :  { %3493 = vsyncpa [#allocation12], 1 }
 0xf90   :  { %3495 = vsyncpa [#allocation12 + $0x1], 1 }
 0xf91   :  { %3496 = vsyncpa [#allocation7], 1 }
 0xf92   :  { %3498 = vsyncpa [#allocation7 + $0x1], 1 }

</bundles_post_ra>
